<compile_context>
chip_gen: v6e
topology: v6e:2x2x1
jax: 0.10.0
libtpu: 0.0.40
codegen_flags: <defaults>
</compile_context>

<pallas_src>
import functools
import math

import jax
import jax.numpy as jnp
from jax import lax
from jax.experimental import pallas as pl
from jax.experimental.pallas import tpu as pltpu

EPS = 1e-5  # torch nn.LayerNorm default


def _layer_norm(x, gamma, beta):
    # biased variance over the last axis, like torch.nn.LayerNorm
    mu = jnp.mean(x, axis=-1, keepdims=True)
    var = jnp.mean((x - mu) ** 2, axis=-1, keepdims=True)
    return (x - mu) * lax.rsqrt(var + EPS) * gamma + beta


# ---------------------------------------------------------------------------
# Fused kernel: whole MultiLayerAttention forward in one pallas_call
# ---------------------------------------------------------------------------
def _mla_kernel(n_heads,
                q_in_ref, s_ref, mdh_ref, mhd_ref,
                wq_ref, bq_ref, wkv_ref, bkv_ref, ga_ref, ba_ref,
                w1_ref, b1_ref, w2_ref, b2_ref, go_ref, bo_ref,
                wc_ref, bc_ref, gc_ref, gbc_ref,
                o_ref,
                q_sc, acc_sc):
    l = pl.program_id(0)           # layer index (sequential carry)
    i = pl.program_id(1)           # branch / variable index (sequential)
    n_var = pl.num_programs(1)

    # Initialize the resident query state once, at the very first grid step.
    @pl.when(jnp.logical_and(l == 0, i == 0))
    def _():
        q_sc[...] = q_in_ref[...]

    # Reset the combine accumulator at the start of every layer.
    @pl.when(i == 0)
    def _():
        acc_sc[...] = jnp.zeros_like(acc_sc)

    query = q_sc[...]              # [B, D]   (old query for the whole layer)
    states = s_ref[i]              # [B, S, D] (states resident in VMEM)
    B, S, D = states.shape
    dh = D // n_heads
    scale = 1.0 / math.sqrt(dh)

    # ---- projections: q is [B, D]; K|V packed into one lane-dense matmul ----
    # 1/sqrt(dh) folded into q (scaling Wq x + b scales q.k exactly like the
    # reference's weight / sqrt(dh)).
    s2d = states.reshape(B * S, D)
    q = (jnp.dot(query, wq_ref[...], preferred_element_type=jnp.float32)
         + bq_ref[...]) * scale
    kv = jnp.dot(s2d, wkv_ref[...], preferred_element_type=jnp.float32) + bkv_ref[...]
    k3 = kv[:, :D].reshape(B, S, D)
    v3 = kv[:, D:].reshape(B, S, D)

    # ---- all heads at once via resident block-mask matmuls (no head loop) ----
    # scores[b, s, h] = <q_h, k_h> : elementwise product then per-head
    # segmented sum as a single MXU matmul against the head mask [D, H].
    e = q[:, None, :] * k3                                        # [B, S, D]
    scores = jnp.dot(e.reshape(B * S, D), mdh_ref[...],
                     preferred_element_type=jnp.float32)
    scores = scores.reshape(B, S, n_heads)                        # [B, S, H]

    # softmax over the key axis (per batch, per head)
    m = jnp.max(scores, axis=1, keepdims=True)
    p = jnp.exp(scores - m)
    denom = jnp.sum(p, axis=1, keepdims=True)
    p = p * pl.reciprocal(denom, approx=True)                     # EUP-routed

    # broadcast per-head probabilities back to D lanes, contract over S
    p_lanes = jnp.dot(p.reshape(B * S, n_heads), mhd_ref[...],
                      preferred_element_type=jnp.float32).reshape(B, S, D)
    attn = jnp.sum(p_lanes * v3, axis=1)                          # [B, D]

    # Attention's residual + LayerNorm
    h_out = _layer_norm(attn + query, ga_ref[...], ba_ref[...])

    # ---- FFN branch: fc2(relu(fc1(h))) + h -> LayerNorm ----
    x = jnp.maximum(
        jnp.dot(h_out, w1_ref[...], preferred_element_type=jnp.float32) + b1_ref[...],
        0.0)
    x = jnp.dot(x, w2_ref[...], preferred_element_type=jnp.float32) + b2_ref[...]
    x = _layer_norm(x + h_out, go_ref[...], bo_ref[...])

    # ---- combine: fc(cat(xs)) == sum_i xs[i] @ Wc[i], accumulated in VMEM ----
    acc_sc[...] += jnp.dot(x, wc_ref[...], preferred_element_type=jnp.float32)

    @pl.when(i == n_var - 1)
    def _():
        y = acc_sc[...] + bc_ref[...]
        new_q = _layer_norm(y + query, gc_ref[...], gbc_ref[...])
        q_sc[...] = new_q          # carry to next layer
        o_ref[...] = new_q         # final layer's value is what gets written back


# ---------------------------------------------------------------------------
# Wrapper
# ---------------------------------------------------------------------------
def multi_layer_attention(query, states, params, n_heads):
    """query: [B, D]; states: [n_var, B, S, D]; params: stacked weights."""
    B, D = query.shape
    V, _, S, _ = states.shape
    L = params["wq"].shape[0]
    H = n_heads
    dh = D // H

    # Per-head block masks (constant across the grid) -> resident VMEM inputs.
    head_ids = jnp.arange(D, dtype=jnp.int32) // dh
    mask_dh = (head_ids[:, None] == jnp.arange(H, dtype=jnp.int32)[None, :]
               ).astype(jnp.float32)                              # [D, H]
    mask_hd = mask_dh.T                                           # [H, D]

    def w_spec(arr):   # (L, V, r, c): per-(layer, branch) weight/bias
        r, c = arr.shape[-2], arr.shape[-1]
        return pl.BlockSpec((None, None, r, c), lambda l, i: (l, i, 0, 0))

    def lw_spec(arr):  # (L, r, c): per-layer combine weight/bias
        r, c = arr.shape[-2], arr.shape[-1]
        return pl.BlockSpec((None, r, c), lambda l, i: (l, 0, 0))

    args = (query, states, mask_dh, mask_hd,
            params["wq"], params["bq"], params["wkv"], params["bkv"],
            params["g_attn"], params["b_attn"],
            params["w1"], params["b1"], params["w2"], params["b2"],
            params["g_out"], params["b_out"],
            params["wc"], params["bc"], params["g_c"], params["b_c"])

    in_specs = [
        pl.BlockSpec((B, D), lambda l, i: (0, 0)),              # query (resident)
        pl.BlockSpec((V, B, S, D), lambda l, i: (0, 0, 0, 0)),  # states (resident)
        pl.BlockSpec((D, H), lambda l, i: (0, 0)),              # head mask D->H
        pl.BlockSpec((H, D), lambda l, i: (0, 0)),              # head mask H->D
        w_spec(params["wq"]), w_spec(params["bq"]),
        w_spec(params["wkv"]), w_spec(params["bkv"]),
        w_spec(params["g_attn"]), w_spec(params["b_attn"]),
        w_spec(params["w1"]), w_spec(params["b1"]),
        w_spec(params["w2"]), w_spec(params["b2"]),
        w_spec(params["g_out"]), w_spec(params["b_out"]),
        w_spec(params["wc"]),
        lw_spec(params["bc"]), lw_spec(params["g_c"]), lw_spec(params["b_c"]),
    ]

    grid_spec = pltpu.PrefetchScalarGridSpec(
        num_scalar_prefetch=0,
        grid=(L, V),
        in_specs=in_specs,
        out_specs=pl.BlockSpec((B, D), lambda l, i: (0, 0)),
        scratch_shapes=[pltpu.VMEM((B, D), jnp.float32),   # query carry
                        pltpu.VMEM((B, D), jnp.float32)],  # combine accumulator
    )

    return pl.pallas_call(
        functools.partial(_mla_kernel, n_heads),
        out_shape=jax.ShapeDtypeStruct((B, D), jnp.float32),
        grid_spec=grid_spec,
        compiler_params=pltpu.CompilerParams(
            dimension_semantics=("arbitrary", "arbitrary")),
    )(*args)


# ---------------------------------------------------------------------------
# Pure-JAX reference (mirrors the torch forward) for verification
# ---------------------------------------------------------------------------
def _ref_forward(query, states, params, n_heads):
    L, V = params["wq"].shape[:2]
    B, D = query.shape
    dh = D // n_heads
    for l in range(L):
        xs = []
        for i in range(V):
            q = query @ params["wq"][l, i] + params["bq"][l, i]
            kv = states[i].reshape(-1, D) @ params["wkv"][l, i] + params["bkv"][l, i]
            k = kv[:, :D].reshape(B, -1, D)
            v = kv[:, D:].reshape(B, -1, D)
            qh = q.reshape(B, n_heads, 1, dh)
            kh = k.reshape(B, -1, n_heads, dh).transpose(0, 2, 1, 3)
            vh = v.reshape(B, -1, n_heads, dh).transpose(0, 2, 1, 3)
            w = jnp.einsum("bhqd,bhkd->bhqk", qh, kh) / jnp.sqrt(jnp.float32(dh))
            a = jax.nn.softmax(w, axis=-1)
            attn = jnp.einsum("bhqk,bhkd->bhqd", a, vh).reshape(B, D)
            h = _layer_norm(attn + query,
                            params["g_attn"][l, i], params["b_attn"][l, i])
            x = jnp.maximum(h @ params["w1"][l, i] + params["b1"][l, i], 0.0)
            x = x @ params["w2"][l, i] + params["b2"][l, i]
            xs.append(_layer_norm(x + h,
                                  params["g_out"][l, i], params["b_out"][l, i]))
        xcat = jnp.concatenate(xs, axis=-1)
        y = xcat @ params["wc"][l].reshape(V * D, D) + params["bc"][l]
        query = _layer_norm(y + query, params["g_c"][l], params["b_c"][l])
    return query


# ---------------------------------------------------------------------------
# Deterministic parameter initialization (stacked layout)
# ---------------------------------------------------------------------------
def _linear(key, fan_in, fan_out):
    kw, kb = jax.random.split(key)
    bound = 1.0 / math.sqrt(fan_in)
    w = jax.random.uniform(kw, (fan_in, fan_out), jnp.float32, -bound, bound)
    b = jax.random.uniform(kb, (fan_out,), jnp.float32, -bound, bound)
    return w, b


def init_params(key, n_layers, n_var, hidden_dim):
    D = hidden_dim
    wq, bq, wkv, bkv = [], [], [], []
    w1, b1, w2, b2 = [], [], [], []
    wc, bc = [], []
    for _ in range(n_layers):
        wq_l, bq_l, wkv_l, bkv_l = [], [], [], []
        w1_l, b1_l, w2_l, b2_l = [], [], [], []
        for _ in range(n_var):
            key, k1, k2, k3, k4, k5 = jax.random.split(key, 6)
            w, b = _linear(k1, D, D); wq_l.append(w); bq_l.append(b[None, :])
            wk, bk = _linear(k2, D, D)
            wv, bv = _linear(k3, D, D)
            wkv_l.append(jnp.concatenate([wk, wv], axis=1))
            bkv_l.append(jnp.concatenate([bk, bv])[None, :])
            w, b = _linear(k4, D, D); w1_l.append(w); b1_l.append(b[None, :])
            w, b = _linear(k5, D, D); w2_l.append(w); b2_l.append(b[None, :])
        key, kc = jax.random.split(key)
        wfull, bfull = _linear(kc, D * n_var, D)
        wc.append(wfull.reshape(n_var, D, D))     # chunk i multiplies branch i
        bc.append(bfull[None, :])
        wq.append(jnp.stack(wq_l)); bq.append(jnp.stack(bq_l))
        wkv.append(jnp.stack(wkv_l)); bkv.append(jnp.stack(bkv_l))
        w1.append(jnp.stack(w1_l)); b1.append(jnp.stack(b1_l))
        w2.append(jnp.stack(w2_l)); b2.append(jnp.stack(b2_l))
    L, V = n_layers, n_var
    return dict(
        wq=jnp.stack(wq), bq=jnp.stack(bq),
        wkv=jnp.stack(wkv), bkv=jnp.stack(bkv),
        g_attn=jnp.ones((L, V, 1, D), jnp.float32),
        b_attn=jnp.zeros((L, V, 1, D), jnp.float32),
        w1=jnp.stack(w1), b1=jnp.stack(b1),
        w2=jnp.stack(w2), b2=jnp.stack(b2),
        g_out=jnp.ones((L, V, 1, D), jnp.float32),
        b_out=jnp.zeros((L, V, 1, D), jnp.float32),
        wc=jnp.stack(wc), bc=jnp.stack(bc),
        g_c=jnp.ones((L, 1, D), jnp.float32),
        b_c=jnp.zeros((L, 1, D), jnp.float32),
    )


# ---------------------------------------------------------------------------
if __name__ == "__main__":
    n_layers, n_var, hidden_dim, n_heads = 2, 2, 32, 2
    B, S = 2, 8

    key = jax.random.PRNGKey(0)
    k_params, k_q, k_s = jax.random.split(key, 3)
    params = init_params(k_params, n_layers, n_var, hidden_dim)

    query = jax.random.normal(k_q, (B, hidden_dim), jnp.float32)
    states = jax.random.normal(k_s, (n_var, B, S, hidden_dim), jnp.float32)

    fn = jax.jit(functools.partial(multi_layer_attention, n_heads=n_heads))
    out = jax.block_until_ready(fn(query, states, params))

    ref = _ref_forward(query, states, params, n_heads)
    assert out.shape == (B, hidden_dim)
    max_err = jnp.max(jnp.abs(out - ref))
    # approx-reciprocal softmax normalization -> slightly relaxed tolerance
    assert jnp.allclose(out, ref, atol=2e-3, rtol=2e-3), f"max abs err {max_err}"

    print("KERNEL_OK")
</pallas_src>

<mosaic_0001>
module attributes {stable_mosaic.version = 11 : i64} {
  func.func @_mla_kernel(%arg0: i32, %arg1: i32, %arg2: memref<2x32xf32, #tpu.memory_space<vmem>>, %arg3: memref<2x2x8x32xf32, #tpu.memory_space<vmem>>, %arg4: memref<32x2xf32, #tpu.memory_space<vmem>>, %arg5: memref<2x32xf32, #tpu.memory_space<vmem>>, %arg6: memref<1x1x32x32xf32, #tpu.memory_space<vmem>>, %arg7: memref<1x1x1x32xf32, #tpu.memory_space<vmem>>, %arg8: memref<1x1x32x64xf32, #tpu.memory_space<vmem>>, %arg9: memref<1x1x1x64xf32, #tpu.memory_space<vmem>>, %arg10: memref<1x1x1x32xf32, #tpu.memory_space<vmem>>, %arg11: memref<1x1x1x32xf32, #tpu.memory_space<vmem>>, %arg12: memref<1x1x32x32xf32, #tpu.memory_space<vmem>>, %arg13: memref<1x1x1x32xf32, #tpu.memory_space<vmem>>, %arg14: memref<1x1x32x32xf32, #tpu.memory_space<vmem>>, %arg15: memref<1x1x1x32xf32, #tpu.memory_space<vmem>>, %arg16: memref<1x1x1x32xf32, #tpu.memory_space<vmem>>, %arg17: memref<1x1x1x32xf32, #tpu.memory_space<vmem>>, %arg18: memref<1x1x32x32xf32, #tpu.memory_space<vmem>>, %arg19: memref<1x1x32xf32, #tpu.memory_space<vmem>>, %arg20: memref<1x1x32xf32, #tpu.memory_space<vmem>>, %arg21: memref<1x1x32xf32, #tpu.memory_space<vmem>>, %arg22: memref<2x32xf32, #tpu.memory_space<vmem>>, %arg23: memref<2x32xf32, #tpu.memory_space<vmem>>, %arg24: memref<2x32xf32, #tpu.memory_space<vmem>>) attributes {dimension_semantics = [#tpu.dimension_semantics<arbitrary>, #tpu.dimension_semantics<arbitrary>], iteration_bounds = array<i64: 2, 2>, scalar_prefetch = 0 : i64, scratch_operands = 2 : i64, tpu.core_type = #tpu.core_type<tc>, window_params = [{pipeline_mode = #tpu.pipeline_mode<synchronous>, transform_indices = @transform_0, window_bounds = array<i64: 2, 32>}, {pipeline_mode = #tpu.pipeline_mode<synchronous>, transform_indices = @transform_1, window_bounds = array<i64: 2, 2, 8, 32>}, {pipeline_mode = #tpu.pipeline_mode<synchronous>, transform_indices = @transform_2, window_bounds = array<i64: 32, 2>}, {pipeline_mode = #tpu.pipeline_mode<synchronous>, transform_indices = @transform_3, window_bounds = array<i64: 2, 32>}, {transform_indices = @transform_4, window_bounds = array<i64: 1, 1, 32, 32>}, {transform_indices = @transform_5, window_bounds = array<i64: 1, 1, 1, 32>}, {transform_indices = @transform_6, window_bounds = array<i64: 1, 1, 32, 64>}, {transform_indices = @transform_7, window_bounds = array<i64: 1, 1, 1, 64>}, {transform_indices = @transform_8, window_bounds = array<i64: 1, 1, 1, 32>}, {transform_indices = @transform_9, window_bounds = array<i64: 1, 1, 1, 32>}, {transform_indices = @transform_10, window_bounds = array<i64: 1, 1, 32, 32>}, {transform_indices = @transform_11, window_bounds = array<i64: 1, 1, 1, 32>}, {transform_indices = @transform_12, window_bounds = array<i64: 1, 1, 32, 32>}, {transform_indices = @transform_13, window_bounds = array<i64: 1, 1, 1, 32>}, {transform_indices = @transform_14, window_bounds = array<i64: 1, 1, 1, 32>}, {transform_indices = @transform_15, window_bounds = array<i64: 1, 1, 1, 32>}, {transform_indices = @transform_16, window_bounds = array<i64: 1, 1, 32, 32>}, {transform_indices = @transform_17, window_bounds = array<i64: 1, 1, 32>}, {transform_indices = @transform_18, window_bounds = array<i64: 1, 1, 32>}, {transform_indices = @transform_19, window_bounds = array<i64: 1, 1, 32>}, {pipeline_mode = #tpu.pipeline_mode<synchronous>, transform_indices = @transform_20, window_bounds = array<i64: 2, 32>}]} {
    %c0_i32 = arith.constant 0 : i32
    %0 = arith.cmpi eq, %arg0, %c0_i32 : i32
    %c0_i32_0 = arith.constant 0 : i32
    %1 = arith.cmpi eq, %arg1, %c0_i32_0 : i32
    %2 = arith.andi %0, %1 : i1
    %3 = arith.extui %2 : i1 to i32
    %c0_i32_1 = arith.constant 0 : i32
    %4 = arith.cmpi ne, %3, %c0_i32_1 : i32
    scf.if %4 {
      %c0_90 = arith.constant 0 : index
      %c0_91 = arith.constant 0 : index
      %135 = vector.load %arg2[%c0_90, %c0_91] : memref<2x32xf32, #tpu.memory_space<vmem>>, vector<2x32xf32>
      %c0_92 = arith.constant 0 : index
      %c0_93 = arith.constant 0 : index
      %136 = vector.load %arg23[%c0_92, %c0_93] : memref<2x32xf32, #tpu.memory_space<vmem>>, vector<2x32xf32>
      tpu.vector_store %arg23[%c0_92, %c0_93], %135 {strides = array<i32>} : memref<2x32xf32, #tpu.memory_space<vmem>>, vector<2x32xf32>,
    } else {
    }
    %c0_i32_2 = arith.constant 0 : i32
    %5 = arith.cmpi eq, %arg1, %c0_i32_2 : i32
    %6 = arith.extui %5 : i1 to i32
    %c0_i32_3 = arith.constant 0 : i32
    %7 = arith.cmpi ne, %6, %c0_i32_3 : i32
    scf.if %7 {
      %cst_90 = arith.constant 0.000000e+00 : f32
      %135 = vector.broadcast %cst_90 : f32 to vector<2x32xf32>
      %c0_91 = arith.constant 0 : index
      %c0_92 = arith.constant 0 : index
      %136 = vector.load %arg24[%c0_91, %c0_92] : memref<2x32xf32, #tpu.memory_space<vmem>>, vector<2x32xf32>
      tpu.vector_store %arg24[%c0_91, %c0_92], %135 {strides = array<i32>} : memref<2x32xf32, #tpu.memory_space<vmem>>, vector<2x32xf32>,
    } else {
    }
    %c0 = arith.constant 0 : index
    %c0_4 = arith.constant 0 : index
    %8 = vector.load %arg23[%c0, %c0_4] : memref<2x32xf32, #tpu.memory_space<vmem>>, vector<2x32xf32>
    %9 = arith.index_cast %arg1 : i32 to index
    %c0_5 = arith.constant 0 : index
    %c0_6 = arith.constant 0 : index
    %c0_7 = arith.constant 0 : index
    %10 = vector.load %arg3[%9, %c0_5, %c0_6, %c0_7] : memref<2x2x8x32xf32, #tpu.memory_space<vmem>>, vector<1x2x8x32xf32>
    %11 = vector.shape_cast %10 : vector<1x2x8x32xf32> to vector<2x8x32xf32>
    %12 = vector.shape_cast %11 : vector<2x8x32xf32> to vector<16x32xf32>
    %c0_8 = arith.constant 0 : index
    %c0_9 = arith.constant 0 : index
    %c0_10 = arith.constant 0 : index
    %c0_11 = arith.constant 0 : index
    %13 = vector.load %arg6[%c0_8, %c0_9, %c0_10, %c0_11] : memref<1x1x32x32xf32, #tpu.memory_space<vmem>>, vector<1x1x32x32xf32>
    %14 = vector.shape_cast %13 : vector<1x1x32x32xf32> to vector<32x32xf32>
    %cst = arith.constant dense<0.000000e+00> : vector<2x32xf32>
    %15 = tpu.matmul %8, %14, %cst {dimension_numbers = #tpu.dot_dimension_numbers<[1], [0], [0], [1], [0, 0, 1, 1], [], []>} : vector<2x32xf32>, vector<32x32xf32>, vector<2x32xf32> -> vector<2x32xf32>
    %c0_12 = arith.constant 0 : index
    %c0_13 = arith.constant 0 : index
    %c0_14 = arith.constant 0 : index
    %c0_15 = arith.constant 0 : index
    %16 = vector.load %arg7[%c0_12, %c0_13, %c0_14, %c0_15] : memref<1x1x1x32xf32, #tpu.memory_space<vmem>>, vector<1x1x1x32xf32>
    %17 = vector.shape_cast %16 : vector<1x1x1x32xf32> to vector<1x32xf32>
    %18 = vector.broadcast %17 : vector<1x32xf32> to vector<2x32xf32>
    %19 = arith.addf %15, %18 : vector<2x32xf32>
    %cst_16 = arith.constant 2.500000e-01 : f32
    %20 = vector.broadcast %cst_16 : f32 to vector<2x32xf32>
    %21 = arith.mulf %19, %20 : vector<2x32xf32>
    %c0_17 = arith.constant 0 : index
    %c0_18 = arith.constant 0 : index
    %c0_19 = arith.constant 0 : index
    %c0_20 = arith.constant 0 : index
    %22 = vector.load %arg8[%c0_17, %c0_18, %c0_19, %c0_20] : memref<1x1x32x64xf32, #tpu.memory_space<vmem>>, vector<1x1x32x64xf32>
    %23 = vector.shape_cast %22 : vector<1x1x32x64xf32> to vector<32x64xf32>
    %cst_21 = arith.constant dense<0.000000e+00> : vector<16x64xf32>
    %24 = tpu.matmul %12, %23, %cst_21 {dimension_numbers = #tpu.dot_dimension_numbers<[1], [0], [0], [1], [0, 0, 1, 1], [], []>} : vector<16x32xf32>, vector<32x64xf32>, vector<16x64xf32> -> vector<16x64xf32>
    %c0_22 = arith.constant 0 : index
    %c0_23 = arith.constant 0 : index
    %c0_24 = arith.constant 0 : index
    %c0_25 = arith.constant 0 : index
    %25 = vector.load %arg9[%c0_22, %c0_23, %c0_24, %c0_25] : memref<1x1x1x64xf32, #tpu.memory_space<vmem>>, vector<1x1x1x64xf32>
    %26 = vector.shape_cast %25 : vector<1x1x1x64xf32> to vector<1x64xf32>
    %27 = vector.broadcast %26 : vector<1x64xf32> to vector<16x64xf32>
    %28 = arith.addf %24, %27 : vector<16x64xf32>
    %29 = vector.extract_strided_slice %28 {offsets = [0, 0], sizes = [16, 32], strides = [1, 1]} : vector<16x64xf32> to vector<16x32xf32>
    %30 = vector.shape_cast %29 : vector<16x32xf32> to vector<2x8x32xf32>
    %31 = vector.extract_strided_slice %28 {offsets = [0, 32], sizes = [16, 32], strides = [1, 1]} : vector<16x64xf32> to vector<16x32xf32>
    %32 = vector.shape_cast %31 : vector<16x32xf32> to vector<2x8x32xf32>
    %33 = vector.shape_cast %21 : vector<2x32xf32> to vector<2x1x32xf32>
    %34 = vector.broadcast %33 : vector<2x1x32xf32> to vector<2x8x32xf32>
    %35 = arith.mulf %34, %30 : vector<2x8x32xf32>
    %36 = vector.shape_cast %35 : vector<2x8x32xf32> to vector<16x32xf32>
    %c0_26 = arith.constant 0 : index
    %c0_27 = arith.constant 0 : index
    %37 = vector.load %arg4[%c0_26, %c0_27] : memref<32x2xf32, #tpu.memory_space<vmem>>, vector<32x2xf32>
    %cst_28 = arith.constant dense<0.000000e+00> : vector<16x2xf32>
    %38 = tpu.matmul %36, %37, %cst_28 {dimension_numbers = #tpu.dot_dimension_numbers<[1], [0], [0], [1], [0, 0, 1, 1], [], []>} : vector<16x32xf32>, vector<32x2xf32>, vector<16x2xf32> -> vector<16x2xf32>
    %39 = vector.shape_cast %38 : vector<16x2xf32> to vector<2x8x2xf32>
    %cst_29 = arith.constant dense<0xFF800000> : vector<2x2xf32>
    %40 = vector.multi_reduction <maximumf>, %39, %cst_29 [1] : vector<2x8x2xf32> to vector<2x2xf32>
    %41 = vector.shape_cast %40 : vector<2x2xf32> to vector<2x1x2xf32>
    %42 = vector.broadcast %41 : vector<2x1x2xf32> to vector<2x8x2xf32>
    %43 = arith.subf %39, %42 : vector<2x8x2xf32>
    %44 = math.exp %43 : vector<2x8x2xf32>
    %cst_30 = arith.constant dense<0.000000e+00> : vector<2x2xf32>
    %45 = vector.multi_reduction <add>, %44, %cst_30 [1] : vector<2x8x2xf32> to vector<2x2xf32>
    %46 = vector.shape_cast %45 : vector<2x2xf32> to vector<2x1x2xf32>
    %47 = tpu.reciprocal %46 {approx = true} : vector<2x1x2xf32> -> vector<2x1x2xf32>
    %48 = vector.broadcast %47 : vector<2x1x2xf32> to vector<2x8x2xf32>
    %49 = arith.mulf %44, %48 : vector<2x8x2xf32>
    %50 = vector.shape_cast %49 : vector<2x8x2xf32> to vector<16x2xf32>
    %c0_31 = arith.constant 0 : index
    %c0_32 = arith.constant 0 : index
    %51 = vector.load %arg5[%c0_31, %c0_32] : memref<2x32xf32, #tpu.memory_space<vmem>>, vector<2x32xf32>
    %cst_33 = arith.constant dense<0.000000e+00> : vector<16x32xf32>
    %52 = tpu.matmul %50, %51, %cst_33 {dimension_numbers = #tpu.dot_dimension_numbers<[1], [0], [0], [1], [0, 0, 1, 1], [], []>} : vector<16x2xf32>, vector<2x32xf32>, vector<16x32xf32> -> vector<16x32xf32>
    %53 = vector.shape_cast %52 : vector<16x32xf32> to vector<2x8x32xf32>
    %54 = arith.mulf %53, %32 : vector<2x8x32xf32>
    %cst_34 = arith.constant dense<0.000000e+00> : vector<2x32xf32>
    %55 = vector.multi_reduction <add>, %54, %cst_34 [1] : vector<2x8x32xf32> to vector<2x32xf32>
    %56 = arith.addf %55, %8 : vector<2x32xf32>
    %c0_35 = arith.constant 0 : index
    %c0_36 = arith.constant 0 : index
    %c0_37 = arith.constant 0 : index
    %c0_38 = arith.constant 0 : index
    %57 = vector.load %arg10[%c0_35, %c0_36, %c0_37, %c0_38] : memref<1x1x1x32xf32, #tpu.memory_space<vmem>>, vector<1x1x1x32xf32>
    %58 = vector.shape_cast %57 : vector<1x1x1x32xf32> to vector<1x32xf32>
    %c0_39 = arith.constant 0 : index
    %c0_40 = arith.constant 0 : index
    %c0_41 = arith.constant 0 : index
    %c0_42 = arith.constant 0 : index
    %59 = vector.load %arg11[%c0_39, %c0_40, %c0_41, %c0_42] : memref<1x1x1x32xf32, #tpu.memory_space<vmem>>, vector<1x1x1x32xf32>
    %60 = vector.shape_cast %59 : vector<1x1x1x32xf32> to vector<1x32xf32>
    %cst_43 = arith.constant dense<0.000000e+00> : vector<2xf32>
    %61 = vector.multi_reduction <add>, %56, %cst_43 [1] : vector<2x32xf32> to vector<2xf32>
    %62 = vector.shape_cast %61 : vector<2xf32> to vector<2x1xf32>
    %cst_44 = arith.constant 3.200000e+01 : f32
    %63 = vector.broadcast %cst_44 : f32 to vector<2x1xf32>
    %64 = arith.divf %62, %63 : vector<2x1xf32>
    %65 = vector.broadcast %64 : vector<2x1xf32> to vector<2x32xf32>
    %66 = arith.subf %56, %65 : vector<2x32xf32>
    %67 = arith.mulf %66, %66 : vector<2x32xf32>
    %cst_45 = arith.constant dense<0.000000e+00> : vector<2xf32>
    %68 = vector.multi_reduction <add>, %67, %cst_45 [1] : vector<2x32xf32> to vector<2xf32>
    %69 = vector.shape_cast %68 : vector<2xf32> to vector<2x1xf32>
    %cst_46 = arith.constant 3.200000e+01 : f32
    %70 = vector.broadcast %cst_46 : f32 to vector<2x1xf32>
    %71 = arith.divf %69, %70 : vector<2x1xf32>
    %72 = vector.broadcast %64 : vector<2x1xf32> to vector<2x32xf32>
    %73 = arith.subf %56, %72 : vector<2x32xf32>
    %cst_47 = arith.constant 9.99999974E-6 : f32
    %74 = vector.broadcast %cst_47 : f32 to vector<2x1xf32>
    %75 = arith.addf %71, %74 : vector<2x1xf32>
    %76 = math.rsqrt %75 : vector<2x1xf32>
    %77 = vector.broadcast %76 : vector<2x1xf32> to vector<2x32xf32>
    %78 = arith.mulf %73, %77 : vector<2x32xf32>
    %79 = vector.broadcast %58 : vector<1x32xf32> to vector<2x32xf32>
    %80 = arith.mulf %78, %79 : vector<2x32xf32>
    %81 = vector.broadcast %60 : vector<1x32xf32> to vector<2x32xf32>
    %82 = arith.addf %80, %81 : vector<2x32xf32>
    %c0_48 = arith.constant 0 : index
    %c0_49 = arith.constant 0 : index
    %c0_50 = arith.constant 0 : index
    %c0_51 = arith.constant 0 : index
    %83 = vector.load %arg12[%c0_48, %c0_49, %c0_50, %c0_51] : memref<1x1x32x32xf32, #tpu.memory_space<vmem>>, vector<1x1x32x32xf32>
    %84 = vector.shape_cast %83 : vector<1x1x32x32xf32> to vector<32x32xf32>
    %cst_52 = arith.constant dense<0.000000e+00> : vector<2x32xf32>
    %85 = tpu.matmul %82, %84, %cst_52 {dimension_numbers = #tpu.dot_dimension_numbers<[1], [0], [0], [1], [0, 0, 1, 1], [], []>} : vector<2x32xf32>, vector<32x32xf32>, vector<2x32xf32> -> vector<2x32xf32>
    %c0_53 = arith.constant 0 : index
    %c0_54 = arith.constant 0 : index
    %c0_55 = arith.constant 0 : index
    %c0_56 = arith.constant 0 : index
    %86 = vector.load %arg13[%c0_53, %c0_54, %c0_55, %c0_56] : memref<1x1x1x32xf32, #tpu.memory_space<vmem>>, vector<1x1x1x32xf32>
    %87 = vector.shape_cast %86 : vector<1x1x1x32xf32> to vector<1x32xf32>
    %88 = vector.broadcast %87 : vector<1x32xf32> to vector<2x32xf32>
    %89 = arith.addf %85, %88 : vector<2x32xf32>
    %cst_57 = arith.constant 0.000000e+00 : f32
    %90 = vector.broadcast %cst_57 : f32 to vector<2x32xf32>
    %91 = arith.maximumf %89, %90 : vector<2x32xf32>
    %c0_58 = arith.constant 0 : index
    %c0_59 = arith.constant 0 : index
    %c0_60 = arith.constant 0 : index
    %c0_61 = arith.constant 0 : index
    %92 = vector.load %arg14[%c0_58, %c0_59, %c0_60, %c0_61] : memref<1x1x32x32xf32, #tpu.memory_space<vmem>>, vector<1x1x32x32xf32>
    %93 = vector.shape_cast %92 : vector<1x1x32x32xf32> to vector<32x32xf32>
    %cst_62 = arith.constant dense<0.000000e+00> : vector<2x32xf32>
    %94 = tpu.matmul %91, %93, %cst_62 {dimension_numbers = #tpu.dot_dimension_numbers<[1], [0], [0], [1], [0, 0, 1, 1], [], []>} : vector<2x32xf32>, vector<32x32xf32>, vector<2x32xf32> -> vector<2x32xf32>
    %c0_63 = arith.constant 0 : index
    %c0_64 = arith.constant 0 : index
    %c0_65 = arith.constant 0 : index
    %c0_66 = arith.constant 0 : index
    %95 = vector.load %arg15[%c0_63, %c0_64, %c0_65, %c0_66] : memref<1x1x1x32xf32, #tpu.memory_space<vmem>>, vector<1x1x1x32xf32>
    %96 = vector.shape_cast %95 : vector<1x1x1x32xf32> to vector<1x32xf32>
    %97 = vector.broadcast %96 : vector<1x32xf32> to vector<2x32xf32>
    %98 = arith.addf %94, %97 : vector<2x32xf32>
    %99 = arith.addf %98, %82 : vector<2x32xf32>
    %c0_67 = arith.constant 0 : index
    %c0_68 = arith.constant 0 : index
    %c0_69 = arith.constant 0 : index
    %c0_70 = arith.constant 0 : index
    %100 = vector.load %arg16[%c0_67, %c0_68, %c0_69, %c0_70] : memref<1x1x1x32xf32, #tpu.memory_space<vmem>>, vector<1x1x1x32xf32>
    %101 = vector.shape_cast %100 : vector<1x1x1x32xf32> to vector<1x32xf32>
    %c0_71 = arith.constant 0 : index
    %c0_72 = arith.constant 0 : index
    %c0_73 = arith.constant 0 : index
    %c0_74 = arith.constant 0 : index
    %102 = vector.load %arg17[%c0_71, %c0_72, %c0_73, %c0_74] : memref<1x1x1x32xf32, #tpu.memory_space<vmem>>, vector<1x1x1x32xf32>
    %103 = vector.shape_cast %102 : vector<1x1x1x32xf32> to vector<1x32xf32>
    %cst_75 = arith.constant dense<0.000000e+00> : vector<2xf32>
    %104 = vector.multi_reduction <add>, %99, %cst_75 [1] : vector<2x32xf32> to vector<2xf32>
    %105 = vector.shape_cast %104 : vector<2xf32> to vector<2x1xf32>
    %cst_76 = arith.constant 3.200000e+01 : f32
    %106 = vector.broadcast %cst_76 : f32 to vector<2x1xf32>
    %107 = arith.divf %105, %106 : vector<2x1xf32>
    %108 = vector.broadcast %107 : vector<2x1xf32> to vector<2x32xf32>
    %109 = arith.subf %99, %108 : vector<2x32xf32>
    %110 = arith.mulf %109, %109 : vector<2x32xf32>
    %cst_77 = arith.constant dense<0.000000e+00> : vector<2xf32>
    %111 = vector.multi_reduction <add>, %110, %cst_77 [1] : vector<2x32xf32> to vector<2xf32>
    %112 = vector.shape_cast %111 : vector<2xf32> to vector<2x1xf32>
    %cst_78 = arith.constant 3.200000e+01 : f32
    %113 = vector.broadcast %cst_78 : f32 to vector<2x1xf32>
    %114 = arith.divf %112, %113 : vector<2x1xf32>
    %115 = vector.broadcast %107 : vector<2x1xf32> to vector<2x32xf32>
    %116 = arith.subf %99, %115 : vector<2x32xf32>
    %cst_79 = arith.constant 9.99999974E-6 : f32
    %117 = vector.broadcast %cst_79 : f32 to vector<2x1xf32>
    %118 = arith.addf %114, %117 : vector<2x1xf32>
    %119 = math.rsqrt %118 : vector<2x1xf32>
    %120 = vector.broadcast %119 : vector<2x1xf32> to vector<2x32xf32>
    %121 = arith.mulf %116, %120 : vector<2x32xf32>
    %122 = vector.broadcast %101 : vector<1x32xf32> to vector<2x32xf32>
    %123 = arith.mulf %121, %122 : vector<2x32xf32>
    %124 = vector.broadcast %103 : vector<1x32xf32> to vector<2x32xf32>
    %125 = arith.addf %123, %124 : vector<2x32xf32>
    %c0_80 = arith.constant 0 : index
    %c0_81 = arith.constant 0 : index
    %126 = vector.load %arg24[%c0_80, %c0_81] : memref<2x32xf32, #tpu.memory_space<vmem>>, vector<2x32xf32>
    %c0_82 = arith.constant 0 : index
    %c0_83 = arith.constant 0 : index
    %c0_84 = arith.constant 0 : index
    %c0_85 = arith.constant 0 : index
    %127 = vector.load %arg18[%c0_82, %c0_83, %c0_84, %c0_85] : memref<1x1x32x32xf32, #tpu.memory_space<vmem>>, vector<1x1x32x32xf32>
    %128 = vector.shape_cast %127 : vector<1x1x32x32xf32> to vector<32x32xf32>
    %cst_86 = arith.constant dense<0.000000e+00> : vector<2x32xf32>
    %129 = tpu.matmul %125, %128, %cst_86 {dimension_numbers = #tpu.dot_dimension_numbers<[1], [0], [0], [1], [0, 0, 1, 1], [], []>} : vector<2x32xf32>, vector<32x32xf32>, vector<2x32xf32> -> vector<2x32xf32>
    %130 = arith.addf %126, %129 : vector<2x32xf32>
    %c0_87 = arith.constant 0 : index
    %c0_88 = arith.constant 0 : index
    %131 = vector.load %arg24[%c0_87, %c0_88] : memref<2x32xf32, #tpu.memory_space<vmem>>, vector<2x32xf32>
    tpu.vector_store %arg24[%c0_87, %c0_88], %130 {strides = array<i32>} : memref<2x32xf32, #tpu.memory_space<vmem>>, vector<2x32xf32>,
    %c1_i32 = arith.constant 1 : i32
    %132 = arith.cmpi eq, %arg1, %c1_i32 : i32
    %133 = arith.extui %132 : i1 to i32
    %c0_i32_89 = arith.constant 0 : i32
    %134 = arith.cmpi ne, %133, %c0_i32_89 : i32
    scf.if %134 {
      %c0_90 = arith.constant 0 : index
      %c0_91 = arith.constant 0 : index
      %135 = vector.load %arg24[%c0_90, %c0_91] : memref<2x32xf32, #tpu.memory_space<vmem>>, vector<2x32xf32>
      %c0_92 = arith.constant 0 : index
      %c0_93 = arith.constant 0 : index
      %c0_94 = arith.constant 0 : index
      %136 = vector.load %arg19[%c0_92, %c0_93, %c0_94] : memref<1x1x32xf32, #tpu.memory_space<vmem>>, vector<1x1x32xf32>
      %137 = vector.shape_cast %136 : vector<1x1x32xf32> to vector<1x32xf32>
      %138 = vector.broadcast %137 : vector<1x32xf32> to vector<2x32xf32>
      %139 = arith.addf %135, %138 : vector<2x32xf32>
      %140 = arith.addf %139, %8 : vector<2x32xf32>
      %c0_95 = arith.constant 0 : index
      %c0_96 = arith.constant 0 : index
      %c0_97 = arith.constant 0 : index
      %141 = vector.load %arg20[%c0_95, %c0_96, %c0_97] : memref<1x1x32xf32, #tpu.memory_space<vmem>>, vector<1x1x32xf32>
      %142 = vector.shape_cast %141 : vector<1x1x32xf32> to vector<1x32xf32>
      %c0_98 = arith.constant 0 : index
      %c0_99 = arith.constant 0 : index
      %c0_100 = arith.constant 0 : index
      %143 = vector.load %arg21[%c0_98, %c0_99, %c0_100] : memref<1x1x32xf32, #tpu.memory_space<vmem>>, vector<1x1x32xf32>
      %144 = vector.shape_cast %143 : vector<1x1x32xf32> to vector<1x32xf32>
      %cst_101 = arith.constant dense<0.000000e+00> : vector<2xf32>
      %145 = vector.multi_reduction <add>, %140, %cst_101 [1] : vector<2x32xf32> to vector<2xf32>
      %146 = vector.shape_cast %145 : vector<2xf32> to vector<2x1xf32>
      %cst_102 = arith.constant 3.200000e+01 : f32
      %147 = vector.broadcast %cst_102 : f32 to vector<2x1xf32>
      %148 = arith.divf %146, %147 : vector<2x1xf32>
      %149 = vector.broadcast %148 : vector<2x1xf32> to vector<2x32xf32>
      %150 = arith.subf %140, %149 : vector<2x32xf32>
      %151 = arith.mulf %150, %150 : vector<2x32xf32>
      %cst_103 = arith.constant dense<0.000000e+00> : vector<2xf32>
      %152 = vector.multi_reduction <add>, %151, %cst_103 [1] : vector<2x32xf32> to vector<2xf32>
      %153 = vector.shape_cast %152 : vector<2xf32> to vector<2x1xf32>
      %cst_104 = arith.constant 3.200000e+01 : f32
      %154 = vector.broadcast %cst_104 : f32 to vector<2x1xf32>
      %155 = arith.divf %153, %154 : vector<2x1xf32>
      %156 = vector.broadcast %148 : vector<2x1xf32> to vector<2x32xf32>
      %157 = arith.subf %140, %156 : vector<2x32xf32>
      %cst_105 = arith.constant 9.99999974E-6 : f32
      %158 = vector.broadcast %cst_105 : f32 to vector<2x1xf32>
      %159 = arith.addf %155, %158 : vector<2x1xf32>
      %160 = math.rsqrt %159 : vector<2x1xf32>
      %161 = vector.broadcast %160 : vector<2x1xf32> to vector<2x32xf32>
      %162 = arith.mulf %157, %161 : vector<2x32xf32>
      %163 = vector.broadcast %142 : vector<1x32xf32> to vector<2x32xf32>
      %164 = arith.mulf %162, %163 : vector<2x32xf32>
      %165 = vector.broadcast %144 : vector<1x32xf32> to vector<2x32xf32>
      %166 = arith.addf %164, %165 : vector<2x32xf32>
      %c0_106 = arith.constant 0 : index
      %c0_107 = arith.constant 0 : index
      %167 = vector.load %arg23[%c0_106, %c0_107] : memref<2x32xf32, #tpu.memory_space<vmem>>, vector<2x32xf32>
      tpu.vector_store %arg23[%c0_106, %c0_107], %166 {strides = array<i32>} : memref<2x32xf32, #tpu.memory_space<vmem>>, vector<2x32xf32>,
      %c0_108 = arith.constant 0 : index
      %c0_109 = arith.constant 0 : index
      %168 = vector.load %arg22[%c0_108, %c0_109] : memref<2x32xf32, #tpu.memory_space<vmem>>, vector<2x32xf32>
      tpu.vector_store %arg22[%c0_108, %c0_109], %166 {strides = array<i32>} : memref<2x32xf32, #tpu.memory_space<vmem>>, vector<2x32xf32>,
    } else {
    }
    return
  }
  func.func @transform_0(%arg0: i32, %arg1: i32) -> (i32, i32) {
    %c0_i32 = arith.constant 0 : i32
    %c0_i32_0 = arith.constant 0 : i32
    %c0_i32_1 = arith.constant 0 : i32
    return %c0_i32, %c0_i32_0 : i32, i32
  }
  func.func @transform_1(%arg0: i32, %arg1: i32) -> (i32, i32, i32, i32) {
    %c0_i32 = arith.constant 0 : i32
    %c0_i32_0 = arith.constant 0 : i32
    %c0_i32_1 = arith.constant 0 : i32
    %c0_i32_2 = arith.constant 0 : i32
    %c0_i32_3 = arith.constant 0 : i32
    return %c0_i32, %c0_i32_0, %c0_i32_1, %c0_i32_2 : i32, i32, i32, i32
  }
  func.func @transform_2(%arg0: i32, %arg1: i32) -> (i32, i32) {
    %c0_i32 = arith.constant 0 : i32
    %c0_i32_0 = arith.constant 0 : i32
    %c0_i32_1 = arith.constant 0 : i32
    return %c0_i32, %c0_i32_0 : i32, i32
  }
  func.func @transform_3(%arg0: i32, %arg1: i32) -> (i32, i32) {
    %c0_i32 = arith.constant 0 : i32
    %c0_i32_0 = arith.constant 0 : i32
    %c0_i32_1 = arith.constant 0 : i32
    return %c0_i32, %c0_i32_0 : i32, i32
  }
  func.func @transform_4(%arg0: i32, %arg1: i32) -> (i32, i32, i32, i32) {
    %c0_i32 = arith.constant 0 : i32
    %c0_i32_0 = arith.constant 0 : i32
    %c0_i32_1 = arith.constant 0 : i32
    return %arg0, %arg1, %c0_i32, %c0_i32_0 : i32, i32, i32, i32
  }
  func.func @transform_5(%arg0: i32, %arg1: i32) -> (i32, i32, i32, i32) {
    %c0_i32 = arith.constant 0 : i32
    %c0_i32_0 = arith.constant 0 : i32
    %c0_i32_1 = arith.constant 0 : i32
    return %arg0, %arg1, %c0_i32, %c0_i32_0 : i32, i32, i32, i32
  }
  func.func @transform_6(%arg0: i32, %arg1: i32) -> (i32, i32, i32, i32) {
    %c0_i32 = arith.constant 0 : i32
    %c0_i32_0 = arith.constant 0 : i32
    %c0_i32_1 = arith.constant 0 : i32
    return %arg0, %arg1, %c0_i32, %c0_i32_0 : i32, i32, i32, i32
  }
  func.func @transform_7(%arg0: i32, %arg1: i32) -> (i32, i32, i32, i32) {
    %c0_i32 = arith.constant 0 : i32
    %c0_i32_0 = arith.constant 0 : i32
    %c0_i32_1 = arith.constant 0 : i32
    return %arg0, %arg1, %c0_i32, %c0_i32_0 : i32, i32, i32, i32
  }
  func.func @transform_8(%arg0: i32, %arg1: i32) -> (i32, i32, i32, i32) {
    %c0_i32 = arith.constant 0 : i32
    %c0_i32_0 = arith.constant 0 : i32
    %c0_i32_1 = arith.constant 0 : i32
    return %arg0, %arg1, %c0_i32, %c0_i32_0 : i32, i32, i32, i32
  }
  func.func @transform_9(%arg0: i32, %arg1: i32) -> (i32, i32, i32, i32) {
    %c0_i32 = arith.constant 0 : i32
    %c0_i32_0 = arith.constant 0 : i32
    %c0_i32_1 = arith.constant 0 : i32
    return %arg0, %arg1, %c0_i32, %c0_i32_0 : i32, i32, i32, i32
  }
  func.func @transform_10(%arg0: i32, %arg1: i32) -> (i32, i32, i32, i32) {
    %c0_i32 = arith.constant 0 : i32
    %c0_i32_0 = arith.constant 0 : i32
    %c0_i32_1 = arith.constant 0 : i32
    return %arg0, %arg1, %c0_i32, %c0_i32_0 : i32, i32, i32, i32
  }
  func.func @transform_11(%arg0: i32, %arg1: i32) -> (i32, i32, i32, i32) {
    %c0_i32 = arith.constant 0 : i32
    %c0_i32_0 = arith.constant 0 : i32
    %c0_i32_1 = arith.constant 0 : i32
    return %arg0, %arg1, %c0_i32, %c0_i32_0 : i32, i32, i32, i32
  }
  func.func @transform_12(%arg0: i32, %arg1: i32) -> (i32, i32, i32, i32) {
    %c0_i32 = arith.constant 0 : i32
    %c0_i32_0 = arith.constant 0 : i32
    %c0_i32_1 = arith.constant 0 : i32
    return %arg0, %arg1, %c0_i32, %c0_i32_0 : i32, i32, i32, i32
  }
  func.func @transform_13(%arg0: i32, %arg1: i32) -> (i32, i32, i32, i32) {
    %c0_i32 = arith.constant 0 : i32
    %c0_i32_0 = arith.constant 0 : i32
    %c0_i32_1 = arith.constant 0 : i32
    return %arg0, %arg1, %c0_i32, %c0_i32_0 : i32, i32, i32, i32
  }
  func.func @transform_14(%arg0: i32, %arg1: i32) -> (i32, i32, i32, i32) {
    %c0_i32 = arith.constant 0 : i32
    %c0_i32_0 = arith.constant 0 : i32
    %c0_i32_1 = arith.constant 0 : i32
    return %arg0, %arg1, %c0_i32, %c0_i32_0 : i32, i32, i32, i32
  }
  func.func @transform_15(%arg0: i32, %arg1: i32) -> (i32, i32, i32, i32) {
    %c0_i32 = arith.constant 0 : i32
    %c0_i32_0 = arith.constant 0 : i32
    %c0_i32_1 = arith.constant 0 : i32
    return %arg0, %arg1, %c0_i32, %c0_i32_0 : i32, i32, i32, i32
  }
  func.func @transform_16(%arg0: i32, %arg1: i32) -> (i32, i32, i32, i32) {
    %c0_i32 = arith.constant 0 : i32
    %c0_i32_0 = arith.constant 0 : i32
    %c0_i32_1 = arith.constant 0 : i32
    return %arg0, %arg1, %c0_i32, %c0_i32_0 : i32, i32, i32, i32
  }
  func.func @transform_17(%arg0: i32, %arg1: i32) -> (i32, i32, i32) {
    %c0_i32 = arith.constant 0 : i32
    %c0_i32_0 = arith.constant 0 : i32
    %c0_i32_1 = arith.constant 0 : i32
    return %arg0, %c0_i32, %c0_i32_0 : i32, i32, i32
  }
  func.func @transform_18(%arg0: i32, %arg1: i32) -> (i32, i32, i32) {
    %c0_i32 = arith.constant 0 : i32
    %c0_i32_0 = arith.constant 0 : i32
    %c0_i32_1 = arith.constant 0 : i32
    return %arg0, %c0_i32, %c0_i32_0 : i32, i32, i32
  }
  func.func @transform_19(%arg0: i32, %arg1: i32) -> (i32, i32, i32) {
    %c0_i32 = arith.constant 0 : i32
    %c0_i32_0 = arith.constant 0 : i32
    %c0_i32_1 = arith.constant 0 : i32
    return %arg0, %c0_i32, %c0_i32_0 : i32, i32, i32
  }
  func.func @transform_20(%arg0: i32, %arg1: i32) -> (i32, i32) {
    %c0_i32 = arith.constant 0 : i32
    %c0_i32_0 = arith.constant 0 : i32
    %c0_i32_1 = arith.constant 0 : i32
    return %c0_i32, %c0_i32_0 : i32, i32
  }
}

</mosaic_0001>

<bundles_post_ra>
// kernel: multi_layer_attention.1
= control target key start
LH: loop header
LB: loop body
LE: loop exit
PB: predicated region body
PF: predicated region fallthrough
CT: control target
= control target key end

     0   :  { %s3897_s0 = inlined_call_operand.hbm [shape: f32[2,32], index: 0, kind: input, shape index: {}]   ;;  %s3898_s1 = inlined_call_operand.vmem [shape: f32[2,2,8,32], index: 1, kind: input, shape index: {}]   ;;  %s3899_s2 = inlined_call_operand.vmem [shape: f32[32,2], index: 2, kind: input, shape index: {}]   ;;  %s3900_s3 = inlined_call_operand.vmem [shape: f32[2,32], index: 3, kind: input, shape index: {}]   ;;  %s3901_s4 = inlined_call_operand.hbm [shape: f32[2,2,32,32], index: 4, kind: input, shape index: {}]   ;;  %s3902_s5 = inlined_call_operand.vmem [shape: f32[2,2,1,32], index: 5, kind: input, shape index: {}]   ;;  %s3903_s6 = inlined_call_operand.hbm [shape: f32[2,2,32,64], index: 6, kind: input, shape index: {}]   ;;  %s3904_s7 = inlined_call_operand.vmem [shape: f32[2,2,1,64], index: 7, kind: input, shape index: {}]   ;;  %s3905_s8 = inlined_call_operand.vmem [shape: f32[2,2,1,32], index: 8, kind: input, shape index: {}]   ;;  %s3906_s9 = inlined_call_operand.hbm [shape: f32[2,2,1,32], index: 9, kind: input, shape index: {}]   ;;  %s3907_s10 = inlined_call_operand.hbm [shape: f32[2,2,32,32], index: 10, kind: input, shape index: {}]   ;;  %s3908_s11 = inlined_call_operand.hbm [shape: f32[2,2,1,32], index: 11, kind: input, shape index: {}]   ;;  %s3909_s12 = inlined_call_operand.hbm [shape: f32[2,2,32,32], index: 12, kind: input, shape index: {}]   ;;  %s3910_s13 = inlined_call_operand.hbm [shape: f32[2,2,1,32], index: 13, kind: input, shape index: {}]   ;;  %s3911_s14 = inlined_call_operand.vmem [shape: f32[2,2,1,32], index: 14, kind: input, shape index: {}]   ;;  %s3912_s15 = inlined_call_operand.hbm [shape: f32[2,2,1,32], index: 15, kind: input, shape index: {}]   ;;  %s3913_s16 = inlined_call_operand.hbm [shape: f32[2,2,32,32], index: 16, kind: input, shape index: {}]   ;;  %s3914_s17 = inlined_call_operand.vmem [shape: f32[2,1,32], index: 17, kind: input, shape index: {}]   ;;  %s3915_s18 = inlined_call_operand.vmem [shape: f32[2,1,32], index: 18, kind: input, shape index: {}]   ;;  %s3916_s19 = inlined_call_operand.hbm [shape: f32[2,1,32], index: 19, kind: input, shape index: {}]   ;;  %s3917_s20 = inlined_call_operand.hbm [shape: f32[2,32], index: 20, kind: output, shape index: {}]  }
   0x1   :  { %3959 = sst [smem:[#allocation44_spill]] %s3897_s0 }
   0x2   :  { %3960 = sst [smem:[#allocation45_spill]] %s3898_s1 }
   0x3   :  { %3961 = sst [smem:[#allocation46_spill]] %s3899_s2 }
   0x4   :  { %3962 = sst [smem:[#allocation47_spill]] %s3900_s3 }
   0x5   :  { %3963 = sst [smem:[#allocation48_spill]] %s3901_s4 }
   0x6   :  { %3964 = sst [smem:[#allocation49_spill]] %s3902_s5 }
   0x7   :  { %3965 = sst [smem:[#allocation50_spill]] %s3903_s6 }
   0x8   :  { %3966 = sst [smem:[#allocation51_spill]] %s3904_s7 }
   0x9   :  { %3967 = sst [smem:[#allocation52_spill]] %s3905_s8 }
   0xa   :  { %3968 = sst [smem:[#allocation53_spill]] %s3906_s9 }
   0xb   :  { %3969 = sst [smem:[#allocation54_spill]] %s3907_s10 }
   0xc   :  { %3970 = sst [smem:[#allocation55_spill]] %s3908_s11 }
   0xd   :  { %3971 = sst [smem:[#allocation56_spill]] %s3909_s12 }
   0xe   :  { %3972 = sst [smem:[#allocation57_spill]] %s3910_s13 }
   0xf   :  { %3973 = sst [smem:[#allocation58_spill]] %s3911_s14 }
  0x10   :  { %3974 = sst [smem:[#allocation59_spill]] %s3912_s15 }
  0x11   :  { %3975 = sst [smem:[#allocation60_spill]] %s3913_s16 }
  0x12   :  { %3976 = sst [smem:[#allocation61_spill]] %s3914_s17 }
  0x13   :  { %3977 = sst [smem:[#allocation62_spill]] %s3915_s18 }
  0x14   :  { %3978 = sst [smem:[#allocation63_spill]] %s3916_s19 }
  0x15   :  { %3979 = sst [smem:[#allocation64_spill]] %s3917_s20 }
  0x16   :  { %25 = vsyncpa [#allocation5], 0 }
  0x17   :  { %26 = vsyncpa [#allocation8], 0 }
  0x18   :  { %28 = vsyncpa [#allocation8 + $0x1], 0 }
  0x19   :  { %29 = vsyncpa [#allocation11], 0 }
  0x1a   :  { %31 = vsyncpa [#allocation11 + $0x1], 0 }
  0x1b   :  { %32 = vsyncpa [#allocation14], 0 }
  0x1c   :  { %34 = vsyncpa [#allocation14 + $0x1], 0 }
  0x1d   :  { %35 = vsyncpa [#allocation17], 0 }
  0x1e   :  { %37 = vsyncpa [#allocation17 + $0x1], 0 }
  0x1f   :  { %38 = vsyncpa [#allocation20], 0 }
  0x20   :  { %40 = vsyncpa [#allocation20 + $0x1], 0 }
  0x21   :  { %41 = vsyncpa [#allocation6], 0  ;;  %s3299_s1 = smov 0   ;;  %s3301_s22 = smov 0  }
  0x22   :  { %s3303_s23 = smov 0   ;;  %s3305_s24 = smov 0  }
  0x23   :  { %s3307_s2 = smov 0   ;;  %s3309_s25 = smov 0  }
  0x24   :  { %s3311_s3 = smov 0   ;;  %s3313_s26 = smov 0  }
  0x25   :  { %s3315_s27 = smov 0   ;;  %s3317_s28 = smov 0  }
  0x26   :  { %s3319_s4 = smov 0  }
  0x27 LB: > { %3980 = sst [smem:[#allocation31_spill]] %s3133_s1  ;;  %s3919_s29 = sadd.s32 1, %s3165_s27  ;;  %s3173_s4 = sphi %s3319_s4, %s47_s4   ;;  %s3169_s28 = sphi %s3317_s28, %s4070_s28   ;;  %s3165_s27 = sphi %s3315_s27, %s4069_s27   ;;  %s3161_s26 = sphi %s3313_s26, %s4068_s26   ;;  %s3157_s3 = sphi %s3311_s3, %s4067_s3   ;;  %s3153_s25 = sphi %s3309_s25, %s4066_s25   ;;  %s3149_s2 = sphi %s3307_s2, %s4073_s2   ;;  %s3145_s24 = sphi %s3305_s24, %s4072_s24   ;;  %s3141_s23 = sphi %s3303_s23, %s4071_s23   ;;  %s3137_s22 = sphi %s3301_s22, %s4064_s22   ;;  %s3133_s1 = sphi %s3299_s1, %s4063_s1  }
  0x28   : > { %3981 = sst [smem:[#allocation32_spill]] %s3137_s22  ;;  %p159_p0 = scmp.ne.s32.totalorder %s3153_s25, %s3149_s2 }
  0x29   : > { %3982 = sst [smem:[#allocation33_spill]] %s3141_s23  ;;  %p3359_p1 = scmp.ge.s32.totalorder %s3919_s29, 2 }
  0x2a   : > { %3983 = sst [smem:[#allocation34_spill]] %s3153_s25  ;;  %p3943_p2 = scmp.eq.s32.totalorder %s3173_s4, 0 }
  0x2b   : > { %3984 = sst [smem:[#allocation35_spill]] %s3157_s3  ;;  %p3942_p3 = scmp.lt.s32.totalorder %s3173_s4, 4 }
  0x2c   : > { %3985 = sst [smem:[#allocation36_spill]] %s3161_s26  ;;  %p161_p4 = por %p3943_p2, %p159_p0 }
  0x2d   : > { %3986 = sst [smem:[#allocation37_spill]] %s3165_s27  ;;  %s3368_s0 = sand.u32 1, %s3173_s4  }
  0x2e   : > { %3987 = sst [smem:[#allocation38_spill]] %s3169_s28  ;;  %s3371_s21 = sand.u32 1, %s3153_s25  }
  0x2f   : > { %s3988_s30 = scalar_select %p3359_p1, 1, 0 }
  0x30   : > { %s3374_s20 = sshll.u32 %s3371_s21, 5  ;;  %s2372_s14 = sshll.u32 %s3165_s27, 2 }
  0x31   : > { %3989 = sst [smem:[#allocation39_spill]] %s3988_s30  ;;  %s2373_s8 = sshll.u32 %s3169_s28, 3 }
  0x32   : > { %s654_s7 = sadd.s32 %s2373_s8, %s2372_s14  ;;  %s648_s29 = scalar_lea.vmem [#allocation7], %s3374_s20 }
  0x33   : > { %s657_s5 = sshll.u32 %s648_s29, 4  ;;  %s3379_s18 = sshll.u32 %s654_s7, 7  ;;  %s658_s5 = int_to_ptr.vmem [resolvable:$true] %s657_s5 }
  0x34   : > { %s3990_s26 = sld [smem:[#allocation48_spill]]  ;;  %p3387_p5 = pnand %p3942_p3, %p161_p4 }
  0x35   : > { %s3933_s25 = scalar_lea.sflag [#allocation8], %s3368_s0  ;;  %s2738_s7 = scalar_lea.vmem %s658_s5, 512 }
  0x36   : > { %p3394_p6 = pneg %p3387_p5  ;;  %p2739_p7 = scmp.ne.s32.totalorder %s658_s5, %s2738_s7 }
  0x37   : > { %s3175_s14 = smov [#allocation7]  }
  0x38   : > { %p2741_p8 = pnand %p2739_p7, %p3394_p6  ;;  %s2743_s17 = sshll.u32 %s3175_s14, 4  ;;  %s2744_s17 = int_to_ptr.vmem [resolvable:$false] %s2743_s17 }
  0x39   : > { %s2745_s3 = scalar_lea.vmem %s2744_s17, 1024  ;;  %p2746_p10 = scmp.lt.s32.totalorder %s658_s5, %s2744_s17 }
  0x3a   : > { %s656_s19 = scalar_lea.hbm %s3990_s26, %s3379_s18  ;;  %p2742_p9 = pneg %p2741_p8 }
  0x3b   : > { %p2747_p11 = scmp.lt.s32.totalorder %s2745_s3, %s2738_s7 }
  0x3d   : > { %p2748_p12 = por %p2747_p11, %p2746_p10 }
  0x3f   : > { %p2749_p13 = pnand %p2748_p12, %p2742_p9 }
  0x41   : > { %2752 = shalt.err (!%p2749_p13)
}
  0x42   : > { %s3938_s26 = smov 128   ;;  %s3940_s29 = smov 8  }
  0x43   : > { %2581 = dma.hbm_to_vmem [thread:$0]  (!%p3387_p5), %s656_s19, 512, %s658_s5, %s3933_s25, %s3938_s26, %s3938_s26, %s3940_s29  }
  0x44   : > { %s2379_s14 = sshll.u32 %s3169_s28, 1  ;;  %s723_s17 = scalar_lea.vmem [#allocation10], %s3371_s21 }
  0x45   : > { %s728_s7 = sadd.s32 %s3165_s27, %s2379_s14  ;;  %s732_s3 = sshll.u32 %s723_s17, 4  ;;  %s733_s3 = int_to_ptr.vmem [resolvable:$true] %s732_s3 }
  0x46   : > { %s3410_s30 = sshll.u32 %s728_s7, 4  ;;  %s3993_s9 = sld [smem:[#allocation53_spill]] }
  0x47   : > { %s3934_s6 = scalar_lea.sflag [#allocation11], %s3368_s0  ;;  %s2766_s22 = scalar_lea.vmem %s733_s3, 16 }
  0x48   : > { %p2767_p0 = scmp.ne.s32.totalorder %s733_s3, %s2766_s22  ;;  %s3178_s1 = smov [#allocation10]  }
  0x49   : > { %s2771_s5 = sshll.u32 %s3178_s1, 4  ;;  %s2772_s5 = int_to_ptr.vmem [resolvable:$false] %s2771_s5 }
  0x4a   : > { %p2769_p4 = pnand %p2767_p0, %p3394_p6  ;;  %s2773_s19 = scalar_lea.vmem %s2772_s5, 32 }
  0x4b   : > { %p2774_p8 = scmp.lt.s32.totalorder %s733_s3, %s2772_s5  ;;  %p2775_p9 = scmp.lt.s32.totalorder %s2773_s19, %s2766_s22 }
  0x4c   : > { %s730_s10 = scalar_lea.hbm %s3993_s9, %s3410_s30  ;;  %p2770_p7 = pneg %p2769_p4 }
  0x4d   : > { %p2776_p10 = por %p2775_p9, %p2774_p8 }
  0x4f   : > { %p2777_p11 = pnand %p2776_p10, %p2770_p7 }
  0x51   : > { %2780 = shalt.err (!%p2777_p11)
}
  0x52   : > { %2587 = dma.hbm_to_vmem [thread:$0]  (!%p3387_p5), %s730_s10, 16, %s733_s3, %s3934_s6  }
  0x53   : > { %s3994_s11 = sld [smem:[#allocation55_spill]]  ;;  %s765_s14 = scalar_lea.vmem [#allocation13], %s3371_s21 }
  0x54   : > { %s774_s7 = sshll.u32 %s765_s14, 4  ;;  %s3935_s22 = scalar_lea.sflag [#allocation14], %s3368_s0  ;;  %s775_s7 = int_to_ptr.vmem [resolvable:$true] %s774_s7 }
  0x55   : > { %s2794_s17 = scalar_lea.vmem %s775_s7, 16  ;;  %s3179_s5 = smov [#allocation13]  }
  0x56   : > { %p2795_p12 = scmp.ne.s32.totalorder %s775_s7, %s2794_s17  ;;  %s2799_s19 = sshll.u32 %s3179_s5, 4  ;;  %s2800_s19 = int_to_ptr.vmem [resolvable:$false] %s2799_s19 }
  0x57   : > { %s2801_s25 = scalar_lea.vmem %s2800_s19, 32  ;;  %p2802_p4 = scmp.lt.s32.totalorder %s775_s7, %s2800_s19 }
  0x58   : > { %p2797_p13 = pnand %p2795_p12, %p3394_p6  ;;  %p2803_p7 = scmp.lt.s32.totalorder %s2801_s25, %s2794_s17 }
  0x59   : > { %s772_s1 = scalar_lea.hbm %s3994_s11, %s3410_s30 }
  0x5a   : > { %p2798_p0 = pneg %p2797_p13  ;;  %p2804_p8 = por %p2803_p7, %p2802_p4 }
  0x5c   : > { %p2805_p9 = pnand %p2804_p8, %p2798_p0 }
  0x5e   : > { %2808 = shalt.err (!%p2805_p9)
}
  0x5f   : > { %2593 = dma.hbm_to_vmem [thread:$0]  (!%p3387_p5), %s772_s1, 16, %s775_s7, %s3935_s22  }
  0x60   : > { %s3995_s13 = sld [smem:[#allocation57_spill]]  ;;  %s807_s15 = scalar_lea.vmem [#allocation16], %s3371_s21 }
  0x61   : > { %s816_s14 = sshll.u32 %s807_s15, 4  ;;  %s3937_s25 = scalar_lea.sflag [#allocation17], %s3368_s0  ;;  %s817_s14 = int_to_ptr.vmem [resolvable:$true] %s816_s14 }
  0x62   : > { %s2822_s17 = scalar_lea.vmem %s817_s14, 16  ;;  %s3180_s5 = smov [#allocation16]  }
  0x63   : > { %p2823_p10 = scmp.ne.s32.totalorder %s817_s14, %s2822_s17  ;;  %s2827_s19 = sshll.u32 %s3180_s5, 4  ;;  %s2828_s19 = int_to_ptr.vmem [resolvable:$false] %s2827_s19 }
  0x64   : > { %s2829_s6 = scalar_lea.vmem %s2828_s19, 32  ;;  %p2830_p13 = scmp.lt.s32.totalorder %s817_s14, %s2828_s19 }
  0x65   : > { %p2825_p11 = pnand %p2823_p10, %p3394_p6  ;;  %p2831_p0 = scmp.lt.s32.totalorder %s2829_s6, %s2822_s17 }
  0x66   : > { %s814_s12 = scalar_lea.hbm %s3995_s13, %s3410_s30 }
  0x67   : > { %p2826_p12 = pneg %p2825_p11  ;;  %p2832_p4 = por %p2831_p0, %p2830_p13 }
  0x69   : > { %p2833_p7 = pnand %p2832_p4, %p2826_p12 }
  0x6b   : > { %2836 = shalt.err (!%p2833_p7)
}
  0x6c   : > { %2599 = dma.hbm_to_vmem [thread:$0]  (!%p3387_p5), %s814_s12, 16, %s817_s14, %s3937_s25  }
  0x6d   : > { %s3996_s16 = sld [smem:[#allocation60_spill]]  ;;  %s856_s3 = scalar_lea.vmem [#allocation19], %s3374_s20 }
  0x6e   : > { %s865_s15 = sshll.u32 %s856_s3, 4  ;;  %s3936_s6 = scalar_lea.sflag [#allocation20], %s3368_s0  ;;  %s866_s15 = int_to_ptr.vmem [resolvable:$true] %s865_s15 }
  0x6f   : > { %s2850_s17 = scalar_lea.vmem %s866_s15, 512  ;;  %s3181_s5 = smov [#allocation19]  }
  0x70   : > { %p2851_p8 = scmp.ne.s32.totalorder %s866_s15, %s2850_s17  ;;  %s2855_s19 = sshll.u32 %s3181_s5, 4  ;;  %s2856_s19 = int_to_ptr.vmem [resolvable:$false] %s2855_s19 }
  0x71   : > { %s2857_s22 = scalar_lea.vmem %s2856_s19, 1024  ;;  %p2858_p11 = scmp.lt.s32.totalorder %s866_s15, %s2856_s19 }
  0x72   : > { %p2853_p9 = pnand %p2851_p8, %p3394_p6  ;;  %p2859_p12 = scmp.lt.s32.totalorder %s2857_s22, %s2850_s17 }
  0x73   : > { %s864_s10 = scalar_lea.hbm %s3996_s16, %s3379_s18 }
  0x74   : > { %p2854_p10 = pneg %p2853_p9  ;;  %p2860_p13 = por %p2859_p12, %p2858_p11 }
  0x76   : > { %p2861_p0 = pnand %p2860_p13, %p2854_p10 }
  0x78   : > { %2864 = shalt.err (!%p2861_p0)
}
  0x79   : > { %s3997_s12 = sld [smem:[#allocation31_spill]]  ;;  %s3463_s22 = sadd.s32 4294967295, %s3173_s4  }
  0x7a   : > { %s3998_s14 = sld [smem:[#allocation32_spill]]  ;;  %p165_p4 = scmp.ne.s32.totalorder %s3149_s2, %s3145_s24 }
  0x7b   : > { %2605 = dma.hbm_to_vmem [thread:$0]  (!%p3387_p5), %s864_s10, 512, %s866_s15, %s3936_s6, %s3938_s26, %s3938_s26, %s3940_s29  }
  0x7c   : > { %p3944_p7 = scmp.eq.s32.totalorder %s3463_s22, 0  ;;  %p2368_p9 = scmp.ge.s32.totalorder %s3173_s4, 1 }
  0x7d   : > { %p611_p10 = scmp.lt.s32.totalorder %s3173_s4, 5  ;;  %s3182_s24 = smov [#allocation4]  }
  0x7e   : > { %p3474_p11 = por %p3944_p7, %p165_p4  ;;  %s624_s3 = sshll.u32 %s3182_s24, 4  ;;  %s625_s3 = int_to_ptr.vmem [resolvable:$true] %s624_s3 }
  0x7f   : > { %p3484_p13 = pnand %p2368_p9, %p611_p10  ;;  %s4004_s5 = sld [smem:[#allocation50_spill]] }
  0x80   : > { %p579_p8 = scmp.ne.s32.totalorder %s3998_s14, %s3997_s12  ;;  %s681_s6 = scalar_lea.vmem [#allocation9], %s3374_s20 }
  0x81   : > { %s3999_s1 = scalar_select %p3474_p11, 1, 0 }
  0x82   : > { %p3480_p12 = por %p579_p8, %p3944_p7  ;;  %p2574_p0 = pneg %p3484_p13 }
  0x83   : > { %4000 = sst [smem:[#allocation31_spill]] %s3999_s1  ;;  %s690_s25 = sshll.u32 %s681_s6, 4  ;;  %s3501_s25 = int_to_ptr.vmem [resolvable:$true] %s690_s25 }
  0x84   : > { %s4001_s7 = scalar_select %p3480_p12, 1, 0 }
  0x85   : > { %s689_s19 = scalar_lea.hbm %s4004_s5, %s3379_s18  ;;  %p3496_p4 = pnand %p2574_p0, %p3944_p7 }
  0x86   : > { %4002 = sst [smem:[#allocation40_spill]] %s4001_s7  ;;  %s2876_s24 = scalar_lea.vmem %s625_s3, 32 }
  0x87   : > { %s4006_s9 = sld [smem:[#allocation54_spill]]  ;;  %p2867_p8 = pneg %p3496_p4 }
  0x88   : > { %p2877_p9 = scmp.ne.s32.totalorder %s625_s3, %s2876_s24  ;;  %p2884_p2 = scmp.lt.s32.totalorder %s625_s3, %s625_s3 }
  0x89   : > { %p2885_p0 = scmp.lt.s32.totalorder %s2876_s24, %s2876_s24 }
  0x8a   : > { %p2879_p10 = pnand %p2877_p9, %p2867_p8 }
  0x8b   : > { %p2886_p7 = por %p2885_p0, %p2884_p2 }
  0x8c   : > { %p2880_p3 = pneg %p2879_p10 }
  0x8e   : > { %p2887_p12 = pnand %p2886_p7, %p2880_p3 }
  0x90   : > { %2890 = shalt.err (!%p2887_p12)
}
  0x91   : > { %s4007_s17 = sld [smem:[#allocation44_spill]]  ;;  %s2904_s26 = scalar_lea.vmem %s3501_s25, 512 }
  0x92   : > { %p2905_p11 = scmp.ne.s32.totalorder %s3501_s25, %s2904_s26  ;;  %s3183_s29 = smov [#allocation9]  }
  0x93   : > { %s2909_s24 = sshll.u32 %s3183_s29, 4  ;;  %s2910_s24 = int_to_ptr.vmem [resolvable:$false] %s2909_s24 }
  0x94   : > { %p2907_p8 = pnand %p2905_p11, %p3394_p6  ;;  %s2911_s11 = scalar_lea.vmem %s2910_s24, 1024 }
  0x95   : > { %p2912_p2 = scmp.lt.s32.totalorder %s3501_s25, %s2910_s24  ;;  %p2913_p3 = scmp.lt.s32.totalorder %s2911_s11, %s2904_s26 }
  0x96   : > { %p2908_p9 = pneg %p2907_p8 }
  0x97   : > { %2577 = dma.hbm_to_vmem [thread:$0]  (!%p3496_p4), %s4007_s17, 32, %s625_s3, [#allocation5]  }
  0x98   : > { %p2914_p7 = por %p2913_p3, %p2912_p2 }
  0x9a   : > { %p2915_p12 = pnand %p2914_p7, %p2908_p9 }
  0x9c   : > { %2918 = shalt.err (!%p2915_p12)
}
  0x9d   : > { %s4008_s12 = smov 8   ;;  %s4009_s6 = smov 128  }
  0x9e   : > { %s4010_s3 = scalar_lea.sflag [#allocation8], %s3368_s0  ;;  %s743_s11 = scalar_lea.vmem [#allocation12], %s3374_s20 }
  0x9f   : > { %2584 = dma.hbm_to_vmem [thread:$0]  (!%p3387_p5), %s689_s19, 512, %s3501_s25, %s4010_s3, %s4009_s6, %s4009_s6, %s4008_s12  }
  0xa0   : > { %s752_s26 = sshll.u32 %s743_s11, 4  ;;  %s4011_s13 = sld [smem:[#allocation56_spill]]  ;;  %s753_s26 = int_to_ptr.vmem [resolvable:$true] %s752_s26 }
  0xa1   : > { %s2932_s7 = scalar_lea.vmem %s753_s26, 512  ;;  %s3184_s1 = smov [#allocation12]  }
  0xa2   : > { %p2933_p11 = scmp.ne.s32.totalorder %s753_s26, %s2932_s7  ;;  %s2937_s15 = sshll.u32 %s3184_s1, 4  ;;  %s2938_s15 = int_to_ptr.vmem [resolvable:$false] %s2937_s15 }
  0xa3   : > { %s2939_s17 = scalar_lea.vmem %s2938_s15, 1024  ;;  %p2940_p0 = scmp.lt.s32.totalorder %s753_s26, %s2938_s15 }
  0xa4   : > { %p2935_p4 = pnand %p2933_p11, %p3394_p6  ;;  %p2941_p8 = scmp.lt.s32.totalorder %s2939_s17, %s2932_s7 }
  0xa6   : > { %p2936_p10 = pneg %p2935_p4  ;;  %p2942_p9 = por %p2941_p8, %p2940_p0 }
  0xa8   : > { %p2943_p2 = pnand %p2942_p9, %p2936_p10 }
  0xaa   : > { %2946 = shalt.err (!%p2943_p2)
}
  0xab   : > { %s4012_s25 = scalar_lea.sflag [#allocation11], %s3368_s0  ;;  %s4013_s11 = scalar_lea.hbm %s4006_s9, %s3379_s18 }
  0xac   : > { %2590 = dma.hbm_to_vmem [thread:$0]  (!%p3387_p5), %s4013_s11, 512, %s753_s26, %s4012_s25, %s4009_s6, %s4009_s6, %s4008_s12  }
  0xad   : > { %s785_s1 = scalar_lea.vmem [#allocation15], %s3374_s20  ;;  %s4014_s15 = sld [smem:[#allocation59_spill]] }
  0xae   : > { %s794_s7 = sshll.u32 %s785_s1, 4  ;;  %s3185_s5 = smov [#allocation15]   ;;  %s795_s7 = int_to_ptr.vmem [resolvable:$true] %s794_s7 }
  0xaf   : > { %s2960_s16 = scalar_lea.vmem %s795_s7, 512  ;;  %s2965_s19 = sshll.u32 %s3185_s5, 4  ;;  %s2966_s19 = int_to_ptr.vmem [resolvable:$false] %s2965_s19 }
  0xb0   : > { %p2961_p3 = scmp.ne.s32.totalorder %s795_s7, %s2960_s16  ;;  %s2967_s3 = scalar_lea.vmem %s2966_s19, 1024 }
  0xb1   : > { %p2968_p11 = scmp.lt.s32.totalorder %s795_s7, %s2966_s19  ;;  %p2969_p4 = scmp.lt.s32.totalorder %s2967_s3, %s2960_s16 }
  0xb2   : > { %p2963_p7 = pnand %p2961_p3, %p3394_p6 }
  0xb3   : > { %s843_s17 = scalar_lea.hbm %s4014_s15, %s3410_s30  ;;  %p2970_p10 = por %p2969_p4, %p2968_p11 }
  0xb4   : > { %p2964_p12 = pneg %p2963_p7 }
  0xb6   : > { %p2971_p0 = pnand %p2970_p10, %p2964_p12 }
  0xb8   : > { %2974 = shalt.err (!%p2971_p0)
}
  0xb9   : > { %s4015_s20 = scalar_lea.sflag [#allocation14], %s3368_s0  ;;  %s4016_s11 = scalar_lea.hbm %s4011_s13, %s3379_s18 }
  0xba   : > { %2596 = dma.hbm_to_vmem [thread:$0]  (!%p3387_p5), %s4016_s11, 512, %s795_s7, %s4015_s20, %s4009_s6, %s4009_s6, %s4008_s12  }
  0xbb   : > { %s836_s5 = scalar_lea.vmem [#allocation18], %s3371_s21  ;;  %s3186_s29 = smov [#allocation18]  }
  0xbc   : > { %s845_s16 = sshll.u32 %s836_s5, 4  ;;  %s2993_s24 = sshll.u32 %s3186_s29, 4  ;;  %s846_s16 = int_to_ptr.vmem [resolvable:$true] %s845_s16  ;;  %s2994_s24 = int_to_ptr.vmem [resolvable:$false] %s2993_s24 }
  0xbd   : > { %s2988_s1 = scalar_lea.vmem %s846_s16, 16  ;;  %s2995_s19 = scalar_lea.vmem %s2994_s24, 32 }
  0xbe   : > { %p2989_p8 = scmp.ne.s32.totalorder %s846_s16, %s2988_s1  ;;  %p2996_p3 = scmp.lt.s32.totalorder %s846_s16, %s2994_s24 }
  0xbf   : > { %p2997_p7 = scmp.lt.s32.totalorder %s2995_s19, %s2988_s1 }
  0xc0   : > { %p2991_p9 = pnand %p2989_p8, %p3394_p6 }
  0xc1   : > { %p2998_p12 = por %p2997_p7, %p2996_p3 }
  0xc2   : > { %p2992_p2 = pneg %p2991_p9 }
  0xc4   : > { %p2999_p11 = pnand %p2998_p12, %p2992_p2 }
  0xc6   : > { %3002 = shalt.err (!%p2999_p11)
}
  0xc7   : > { %s4017_s18 = scalar_lea.sflag [#allocation17], %s3368_s0  ;;  %s4019_s6 = sld [smem:[#allocation34_spill]] }
  0xc8   : > { %s4020_s7 = sld [smem:[#allocation33_spill]]  ;;  %s4021_s23 = sadd.s32 1, %s3165_s27 }
  0xc9   : > { %2602 = dma.hbm_to_vmem [thread:$0]  (!%p3387_p5), %s843_s17, 16, %s846_s16, %s4017_s18  }
  0xca   : > { %s4075_s23 = smov (%p3359_p1, %s4021_s23), 0  ;;  %s59_s30 = sadd.s32 1, %s3169_s28 }
  0xcb   : > { %4022 = sst [smem:[#allocation41_spill]] %s4075_s23  ;;  %s4077_s30 = smov (!%p3359_p1, %s59_s30), %s3169_s28 }
  0xcc   : > { %s148_s20 = ssub.s32 %s3165_s27, %s4075_s23  ;;  %p61_p6 = scmp.ge.s32.totalorder %s4077_s30, 2 }
  0xcd   : > { %s152_s3 = sadd.s32 1, %s4019_s6  ;;  %s2399_s11 = sshll.u32 %s3169_s28, 4 }
  0xce   : > { %s566_s26 = sadd.s32 1, %s4020_s7  ;;  %p573_p4 = scmp.ne.s32.totalorder %s4020_s7, %s3998_s14 }
  0xcf   : > { %s889_s25 = sand.u32 1, %s4020_s7   ;;  %s4079_s30 = smov (%p61_p6, %s4077_s30), 0 }
  0xd0   : > { %4023 = sst [smem:[#allocation42_spill]] %s4079_s30  ;;  %p4024_p5 = scmp.eq.s32.totalorder %s3173_s4, 0 }
  0xd1   : > { %s147_s17 = ssub.s32 %s3169_s28, %s4079_s30  ;;  %s4025_s1 = sld [smem:[#allocation63_spill]] }
  0xd2   : > { %p575_p10 = por %p573_p4, %p4024_p5  ;;  %s149_s24 = sor.u32 %s148_s20, %s147_s17 }
  0xd3   : > { %p564_p1 = scmp.eq.s32.totalorder %s147_s17, 0  ;;  %p150_p0 = scmp.eq.s32.totalorder %s149_s24, 0 }
  0xd4   : > { %s890_s19 = scalar_lea.vmem [#allocation21], %s889_s25  ;;  %p4027_p8 = scmp.lt.s32.totalorder %s3173_s4, 4 }
  0xd5   : > { %s897_s18 = sshll.u32 %s890_s19, 4  ;;  %s4081_s7 = smov (!%p564_p1, %s4020_s7), %s566_s26  ;;  %s898_s18 = int_to_ptr.vmem [resolvable:$true] %s897_s18 }
  0xd6   : > { %s4083_s6 = smov (!%p150_p0, %s4019_s6), %s152_s3  ;;  %p3617_p9 = pnand %p4027_p8, %p575_p10 }
  0xd7   : > { %s895_s29 = scalar_lea.hbm %s4025_s1, %s2399_s11  ;;  %4026 = sst [smem:[#allocation43_spill]] %s4083_s6 }
  0xd8   : > { %p3005_p2 = pneg %p3617_p9  ;;  %s3016_s21 = scalar_lea.vmem %s898_s18, 16 }
  0xd9   : > { %p3017_p3 = scmp.ne.s32.totalorder %s898_s18, %s3016_s21  ;;  %s3187_s12 = smov [#allocation21]  }
  0xda   : > { %s3021_s8 = sshll.u32 %s3187_s12, 4  ;;  %s3022_s8 = int_to_ptr.vmem [resolvable:$false] %s3021_s8 }
  0xdb   : > { %p3019_p7 = pnand %p3017_p3, %p3005_p2  ;;  %s3023_s20 = scalar_lea.vmem %s3022_s8, 32 }
  0xdc   : > { %p3024_p11 = scmp.lt.s32.totalorder %s898_s18, %s3022_s8  ;;  %p3025_p6 = scmp.lt.s32.totalorder %s3023_s20, %s3016_s21 }
  0xdd   : > { %p3020_p12 = pneg %p3019_p7 }
  0xde   : > { %p3026_p4 = por %p3025_p6, %p3024_p11 }
  0xe0   : > { %p3027_p5 = pnand %p3026_p4, %p3020_p12 }
  0xe2   : > { %3030 = shalt.err (!%p3027_p5)
}
  0xe3   : > { %s4029_s3 = scalar_lea.sflag [#allocation20], %s3368_s0  ;;  %906 = sbr.rel (%p3484_p13) target bundleno = 2539 (0x9eb), region = 100 }
  0xe4   : > { %2608 = dma.hbm_to_vmem [thread:$0]  (!%p3617_p9), %s895_s29, 16, %s898_s18, %s4029_s3  }
  0xe5   : > { %p4030_p10 = scmp.eq.s32.totalorder (!%p3484_p13), %s3463_s22, 0 }
  0xe8   : > { %3100 = dma.done.wait (%p4030_p10), [#allocation5], 32   ;;  %p4031_p1 = pmov %p4030_p10 }
  0xe9   : > { %s4032_s26 = sld [smem:[#allocation31_spill]]  ;;  %s912_s25 = sand.u32 1, %s3463_s22  }
  0xea   : > { %3102 = vsyncadd (%p4031_p1), [#allocation5], 4294967264  ;;  %s3635_s11 = sand.u32 1, %s3149_s2   ;;  %s913_s5 = scalar_lea.sflag [#allocation8], %s912_s25 }
  0xeb   : > { %s2402_s17 = sshll.u32 %s3635_s11, 5 }
  0xec   : > { %s3638_s0 = scalar_lea.vmem [#allocation7], %s2402_s17 }
  0xef   : > { %p4033_p0 = scmp.ne.s32.totalorder %s4032_s26, 0 }
  0xf1   : > { %3104 = dma.done.wait (%p4033_p0), %s913_s5, 1024  }
  0xf2   : > { %3106 = vsyncadd (%p4033_p0), %s913_s5, 4294966272  ;;  %s3644_s10 = scalar_lea.vmem [#allocation9], %s2402_s17  ;;  %s931_s16 = scalar_lea.sflag [#allocation11], %s912_s25 }
  0xf3   : > { %3108 = dma.done.wait (%p4033_p0), %s931_s16, 528  }
  0xf4   : > { %3110 = vsyncadd (%p4033_p0), %s931_s16, 4294966768  ;;  %s3651_s29 = scalar_lea.vmem [#allocation12], %s2402_s17  ;;  %s948_s24 = scalar_lea.sflag [#allocation14], %s912_s25 }
  0xf5   : > { %3112 = dma.done.wait (%p4033_p0), %s948_s24, 528  }
  0xf6   : > { %3114 = vsyncadd (%p4033_p0), %s948_s24, 4294966768  ;;  %s3658_s18 = scalar_lea.vmem [#allocation15], %s2402_s17  ;;  %s965_s14 = scalar_lea.sflag [#allocation17], %s912_s25 }
  0xf7   : > { %3116 = dma.done.wait (%p4033_p0), %s965_s14, 32  }
  0xf8   : > { %3118 = vsyncadd (%p4033_p0), %s965_s14, 4294967264  ;;  %s981_s8 = scalar_lea.sflag [#allocation20], %s912_s25  ;;  %s3666_s20 = scalar_lea.vmem [#allocation19], %s2402_s17 }
  0xf9   : > { %3120 = dma.done.wait (%p4033_p0), %s981_s8, 512  }
  0xfa   : > { %3122 = vsyncadd (%p4033_p0), %s981_s8, 4294966784  ;;  %s4034_s3 = sld [smem:[#allocation32_spill]] }
  0xfb   : > { %s4035_s5 = sld [smem:[#allocation40_spill]] }
 0x100   : > { %s991_s16 = sand.u32 1, %s4034_s3  }
 0x101   : > { %s3673_s24 = scalar_lea.vmem [#allocation21], %s991_s16  ;;  %p4036_p13 = scmp.ne.s32.totalorder %s4035_s5, 0 }
 0x103   : > { %3124 = dma.done.wait (%p4036_p13), %s981_s8, 16  }
 0x104   : > { %3126 = vsyncadd (%p4036_p13), %s981_s8, 4294967280  ;;  %s4037_s14 = sld [smem:[#allocation36_spill]] }
 0x105   : > { %s4038_s12 = sld [smem:[#allocation35_spill]] }
 0x106   : > { %s4040_s19 = sld [smem:[#allocation62_spill]] }
 0x107   : > { %s4041_s15 = sld [smem:[#allocation49_spill]] }
 0x108   : > { %s4042_s27 = sld [smem:[#allocation51_spill]] }
 0x109   : > { %s4044_s21 = sld [smem:[#allocation58_spill]] }
 0x10a   : > { %p1118_p8 = scmp.lt.s32.totalorder %s4037_s14, 1  ;;  %p1152_p2 = scmp.eq.s32.totalorder %s4037_s14, 0 }
 0x10b   : > { %p1120_p9 = scmp.lt.s32.totalorder %s4038_s12, 1  ;;  %p1153_p3 = scmp.eq.s32.totalorder %s4038_s12, 0 }
 0x10c   : > { %s4085_s14 = smov (!%p1118_p8, %s4037_s14), 1 }
 0x10d   : > { %s4087_s12 = smov (!%p1120_p9, %s4038_s12), 1  ;;  %s2407_s26 = sshll.u32 %s4085_s14, 1 }
 0x10e   : > { %s3692_s5 = sadd.s32 %s2407_s26, %s4087_s12  ;;  %s1151_s1 = scalar_lea.vmem %s4040_s19, %s4085_s14 }
 0x10f   : > { %s1124_s30 = scalar_lea.vmem %s4041_s15, %s3692_s5  ;;  %s1131_s6 = scalar_lea.vmem %s4042_s27, %s3692_s5 }
 0x110   : > { %s4043_s12 = sld [smem:[#allocation52_spill]]  ;;  %s1145_s16 = scalar_lea.vmem %s4044_s21, %s3692_s5 }
 0x111   : > { %p1154_p7 = pnand %p1153_p3, %p1152_p2 }
 0x113   : > { %1157 = sbr.rel (%p1154_p7) target bundleno = 282 (0x11a), region = 148 }
 0x116   : > { %s1138_s26 = scalar_lea.vmem %s4043_s12, %s3692_s5 }
 0x118   : > { %v1158_v0 = vld [vmem:[#allocation4] sm:$0x3]  ;;  %vm1159_vm0 = vcmask 254976  }
 0x119   : > { %1160 = vst.msk [vmem:[#allocation2] sm:$0x3] %vm1159_vm0, %v1158_v0 }
 0x11a PF: > { %s4045_s9 = sld [smem:[#allocation35_spill]] }
 0x120   : > { %p2411_p12 = scmp.ne.s32.totalorder %s4045_s9, 0 }
 0x122   : > { %1163 = sbr.rel (%p2411_p12) target bundleno = 297 (0x129), region = 152 }
 0x127   : > { %vm1164_vm1 = vcmask 254976   ;;  %v3188_v1 = vmov 0.0  }
 0x128   : > { %1165 = vst.msk [vmem:[#allocation3] sm:$0x3] %vm1164_vm1, %v3188_v1 }
 0x129 PF: > { %s4046_s13 = sld [smem:[#allocation35_spill]]  ;;  %v1174_v2 = vld [vmem:[%s3638_s0 + $0x18] sm:$0xff]  ;;  %v3189_v4 = vmov 0.0   ;;  %v1173_v5 = vld [vmem:[%s3638_s0 + $0x10] sm:$0xff]  ;;  %v1172_v7 = vld [vmem:[%s3638_s0 + $0x8] sm:$0xff]  ;;  %vm3190_vm2 = vmmov 0   ;;  %v1353_v20 = vlaneseq }
 0x12a   : > { %v1260_v3 = vld [vmem:[%s3644_s10 + $0x18] sm:$0xff]  ;;  %2475 = vmatprep.subr.mxu0 %v3189_v4  ;;  %v1259_v6 = vld [vmem:[%s3644_s10 + $0x10] sm:$0xff]  ;;  %v1258_v8 = vld [vmem:[%s3644_s10 + $0x8] sm:$0xff]  ;;  %s4047_s23 = sld [smem:[#allocation45_spill]]  ;;  %2483 = vmatprep.mubr.msk.f32.mxu0 %vm3190_vm2, %v3189_v4  ;;  %vm1182_vm3 = vcmask 261120   ;;  %vm1515_vm4 = vcmask 1041408  }
 0x12b   : > { %2486 = vmatprep.subr.mxu1 %v1260_v3  ;;  %2476 = vmatpush3.msra.mxu0 %v1174_v2  ;;  %v1171_v9 = vld [vmem:[%s3638_s0] sm:$0xff]  ;;  %v3732_v11 = vld [vmem:[#allocation2] sm:$0x3]  ;;  %s4048_s3 = sld [smem:[#allocation46_spill]]  ;;  %v3191_v18 = vmov 1966171168  }
 0x12c   : > { %2487 = vmatpush3.msra.mxu1 %v1260_v3  ;;  %2477 = vmatprep.subr.mxu0 %v3189_v4  ;;  %v1257_v10 = vld [vmem:[%s3644_s10] sm:$0xff]  ;;  %v1351_v19 = vunpack.c.l.s4 %v3191_v18  ;;  %v1354_v22 = vshrl.u32 %v1353_v20, 7  ;;  %v2413_v23 = vld [vmem:[%s1124_s30] ss:$0 sm:$0xff]  ;;  %s4052_s25 = sld [smem:[#allocation47_spill]]  ;;  %vm1469_vm5 = vcmask 15360  }
 0x12d   : > { %2488 = vmatprep.subr.mxu1 %v1259_v6  ;;  %2478 = vmatpush3.msra.mxu0 %v1173_v5  ;;  %v2415_v25 = vld [vmem:[%s1131_s6] ss:$0 sm:$0xff]  ;;  %vm1628_vm6 = vcmask 1041409   ;;  %vm1631_vm7 = vcmask 254976   ;;  %s4054_s21 = scalar_lea.vmem [#allocation10], %s3635_s11  ;;  %s4056_s9 = scalar_lea.vmem [#allocation16], %s3635_s11 }
 0x12e   : > { %2489 = vmatpush3.msra.mxu1 %v1259_v6  ;;  %2479 = vmatprep.subr.mxu0 %v3189_v4  ;;  %v1352_v21 = vunpack.c.0.s8 %v1351_v19  ;;  %v1374_v34 = vsub.s32 0, %v1354_v22  ;;  %s4058_s15 = scalar_lea.vmem [#allocation18], %s3635_s11 }
 0x12f   : > { %s2412_s27 = sshll.u32 %s4046_s13, 4  ;;  %2480 = vmatpush3.msra.mxu0 %v1172_v7  ;;  %2490 = vmatprep.subr.mxu1 %v1258_v8  ;;  %p2432_p11 = scmp.ne.s32.totalorder %s4046_s13, 1 }
 0x130   : > { %s1168_s19 = scalar_lea.vmem %s4047_s23, %s2412_s27  ;;  %2481 = vmatprep.subr.mxu0 %v3189_v4  ;;  %2491 = vmatpush3.msra.mxu1 %v1258_v8  ;;  %v1355_v27 = vsub.s32 %v1352_v21, %v1354_v22 }
 0x131   : > { %v1169_v12 = vld [vmem:[%s1168_s19] sm:$0xff]  ;;  %2482 = vmatpush3.msra.mxu0 %v1171_v9  ;;  %2492 = vmatprep.subr.mxu1 %v1257_v10  ;;  %v1170_v13 = vld [vmem:[%s1168_s19 + $0x8] sm:$0xff]  ;;  %s4049_s17 = smov %s4048_s3  ;;  %v1387_v14 = vld [vmem:[%s4048_s3 + $0x18] sm:$0xff]  ;;  %s3192_s3 = smov 96  }
 0x132   : > { %2484 = vmatmul.mubr.msk.f32.vlgmr.msra.gmra.mxu0 %vm1182_vm3, %v3732_v11  ;;  %2493 = vmatpush3.msra.mxu1 %v1257_v10  ;;  %v1386_v15 = vld [vmem:[%s4049_s17 + $0x10] sm:$0xff]  ;;  %v1385_v16 = vld [vmem:[%s4049_s17 + $0x8] sm:$0xff]  ;;  %v1384_v17 = vld [vmem:[%s4049_s17] sm:$0xff] }
 0x133   : > { %2494 = vmatprep.mubr.msk.f32.mxu1 %vm1182_vm3, %v1169_v12  ;;  %2497 = vmatprep.subr.mxu0 %v1387_v14  ;;  %v1508_v43 = vld [vmem:[%s4052_s25] sm:$0x3] }
 0x134   : > { %2495 = vmatmul.mubr.msk.f32.vlgmr.msra.gmra.mxu1 %vm1182_vm3, %v1170_v13  ;;  %2498 = vmatpush3.msra.mxu0 %v1387_v14 }
 0x135   : > { %2499 = vmatprep.subr.mxu0 %v1386_v15  ;;  %2508 = vmatprep.subr.msk.mxu1 %vm1515_vm4, %v1508_v43 }
 0x136   : > { %2500 = vmatpush3.msra.mxu0 %v1386_v15  ;;  %2509 = vmatpush3.msk.msra.mxu1 %vm1515_vm4, %v1508_v43 }
 0x137   : > { %2501 = vmatprep.subr.mxu0 %v1385_v16  ;;  %2513 = vmatprep.subr.mxu1 %v3189_v4 }
 0x138   : > { %2502 = vmatpush3.msra.mxu0 %v1385_v16 }
 0x139   : > { %2503 = vmatprep.subr.mxu0 %v1384_v17 }
 0x13a   : > { %2504 = vmatpush3.msra.mxu0 %v1384_v17 }
 0x13b   : > { %2524 = vmatprep.subr.mxu0 %v3189_v4 }
 0x1f2   : > { %v1252_v24 = vpop.f32.mrf.mxu0 }
 0x1f3   : > { %v1253_v26 = vadd.f32 %v2413_v23, %v1252_v24 }
 0x1f4   : > { %v2485_v28 = vpop.f32.mrf.mxu0  ;;  %v2496_v29 = vpop.f32.mrf.mxu1 }
 0x1f5   : > { %v1256_v30 = vmul.f32 0.25, %v1253_v26  ;;  %v1346_v31 = vadd.f32 %v2496_v29, %v2415_v25 }
 0x1f6   : > { %v1340_v32 = vpop.f32.mrf.mxu1 }
 0x1f7   : > { %v1356_v33 = vrot.slane %v1256_v30, %v1355_v27  ;;  %1598 = vrot.lane.b32.xlu0 %v1346_v31, %s3192_s3  ;;  %v1341_v35 = vadd.f32 %v2415_v25, %v1340_v32 }
 0x1f9   : > { %v1357_v36 = vcombine.high %v1356_v33, %v1356_v33  ;;  %v1364_v37 = vrot.slane %v1356_v33, %v1355_v27 }
 0x1fb   : > { %v1371_v38 = vrot.slane %v1357_v36, %v1355_v27  ;;  %v1375_v39 = vrot.slane %v1364_v37, %v1374_v34  ;;  %1596 = vrot.lane.b32.xlu0 %v1341_v35, %s3192_s3  ;;  %v1618_v37 = vrot.slane %v3732_v11, 1 }
 0x1fd   : > { %v1379_v40 = vrot.slane %v1371_v38, %v1374_v34  ;;  %v1382_v41 = vmul.f32 %v1375_v39, %v1341_v35 }
 0x1ff   : > { %v1383_v42 = vmul.f32 %v1379_v40, %v1346_v31  ;;  %2505 = vmatprep.mubr.msk.f32.mxu0 %vm1182_vm3, %v1382_v41 }
 0x201   : > { %2506 = vmatmul.mubr.msk.f32.vlgmr.msra.gmra.mxu0 %vm1182_vm3, %v1383_v42 }
 0x202   : > { %2532 = vmatprep.mubr.msk.f32.mxu0 %vm3190_vm2, %v3189_v4 }
 0x269   : > { %v1599_v22 = vpop.permute.xlu0 %1598 }
 0x26d   : > { %v1597_v25 = vpop.permute.xlu0 %1596 }
 0x2c1   : > { %v2507_v44 = vpop.f32.mrf.mxu0 }
 0x2c2   : > { %v1477_v45 = vsel %vm1469_vm5, %v2507_v44, -inf }
 0x2c3   : > { %v1478_v46 = vrot.slane %v1477_v45, 4  ;;  %v1460_v47 = vpop.f32.mrf.mxu0 }
 0x2c4   : > { %v1470_v48 = vsel %vm1469_vm5, %v1460_v47, -inf }
 0x2c5   : > { %v1479_v49 = vmax.f32 %v1477_v45, %v1478_v46  ;;  %v1471_v50 = vrot.slane %v1470_v48, 4 }
 0x2c7   : > { %v1480_v51 = vrot.slane %v1479_v49, 2  ;;  %v1472_v52 = vmax.f32 %v1470_v48, %v1471_v50 }
 0x2c9   : > { %v1481_v53 = vmax.f32 %v1479_v49, %v1480_v51  ;;  %v1473_v54 = vrot.slane %v1472_v52, 2 }
 0x2cb   : > { %v1482_v55 = vrot.slane %v1481_v53, 1  ;;  %v1474_v56 = vmax.f32 %v1472_v52, %v1473_v54 }
 0x2cd   : > { %v1483_v57 = vmax.f32 %v1481_v53, %v1482_v55  ;;  %v1475_v58 = vrot.slane %v1474_v56, 1 }
 0x2cf   : > { %v1485_v59 = vsub.f32 %v2507_v44, %v1483_v57  ;;  %v1476_v60 = vmax.f32 %v1474_v56, %v1475_v58  ;;  %v1681_v58 = vld [vmem:[%s3651_s29 + $0x18] sm:$0xff] }
 0x2d1   : > { %v1488_v61 = vmul.f32 1.442695, %v1485_v59  ;;  %v1484_v62 = vsub.f32 %v1460_v47, %v1476_v60  ;;  %v1680_v59 = vld [vmem:[%s3651_s29 + $0x10] sm:$0xff]  ;;  %v1679_v60 = vld [vmem:[%s3651_s29 + $0x8] sm:$0xff] }
 0x2d3   : > { %2711 = vpow2.f32 %v1488_v61  ;;  %v1486_v63 = vmul.f32 1.442695, %v1484_v62  ;;  %v1678_v61 = vld [vmem:[%s3651_s29] sm:$0xff] }
 0x2d4   : > { %v1769_v62 = vld [vmem:[%s3658_s18 + $0x18] sm:$0xff] }
 0x2d5   : > { %2713 = vpow2.f32 %v1486_v63  ;;  %2525 = vmatpush3.msra.mxu0 %v1769_v62 }
 0x2d6   : > { %2526 = vmatprep.subr.mxu0 %v3189_v4 }
 0x2e0   : > { %v2712_v0 = vpop.eup %2711 }
 0x2e1   : > { %v1497_v1 = vsel %vm1469_vm5, %v2712_v0, 0.0 }
 0x2e2   : > { %v2714_v2 = vpop.eup %2713  ;;  %v1498_v3 = vrot.slane %v1497_v1, 4 }
 0x2e3   : > { %v1490_v5 = vsel %vm1469_vm5, %v2714_v2, 0.0 }
 0x2e4   : > { %v1499_v6 = vadd.f32 %v1498_v3, %v1497_v1  ;;  %v1491_v7 = vrot.slane %v1490_v5, 4 }
 0x2e6   : > { %v1500_v8 = vrot.slane %v1499_v6, 2  ;;  %v1492_v9 = vadd.f32 %v1491_v7, %v1490_v5 }
 0x2e8   : > { %v1501_v10 = vadd.f32 %v1500_v8, %v1499_v6  ;;  %v1493_v12 = vrot.slane %v1492_v9, 2  ;;  %v2423_v6 = vld [vmem:[%s1138_s26] ss:$0 sm:$0xff]  ;;  %s4055_s26 = scalar_lea.vmem [#allocation13], %s3635_s11 }
 0x2ea   : > { %v1502_v13 = vrot.slane %v1501_v10, 1  ;;  %v1494_v14 = vadd.f32 %v1493_v12, %v1492_v9 }
 0x2ec   : > { %v1503_v15 = vadd.f32 %v1502_v13, %v1501_v10  ;;  %v1495_v16 = vrot.slane %v1494_v14, 1  ;;  %v2424_v10 = vld [vmem:[%s4054_s21] ss:$0 sm:$0xff] }
 0x2ee   : > { %v1496_v17 = vadd.f32 %v1495_v16, %v1494_v14  ;;  %2715 = vrcp.f32 %v1503_v15  ;;  %v1768_v16 = vld [vmem:[%s3658_s18 + $0x10] sm:$0xff] }
 0x2ef   : > { %2527 = vmatpush3.msra.mxu0 %v1768_v16 }
 0x2f0   : > { %2717 = vrcp.f32 %v1496_v17  ;;  %2528 = vmatprep.subr.mxu0 %v3189_v4  ;;  %v1767_v17 = vld [vmem:[%s3658_s18 + $0x8] sm:$0xff] }
 0x2f1   : > { %2529 = vmatpush3.msra.mxu0 %v1767_v17 }
 0x2f2   : > { %2530 = vmatprep.subr.mxu0 %v3189_v4 }
 0x2fb   : > { %v2716_v18 = vpop.eup %2715 }
 0x2fc   : > { %v1507_v21 = vmul.f32 %v2716_v18, %v2712_v0  ;;  %v1766_v18 = vld [vmem:[%s3658_s18] sm:$0xff] }
 0x2fd   : > { %v2718_v19 = vpop.eup %2717  ;;  %2531 = vmatpush3.msra.mxu0 %v1766_v18 }
 0x2fe   : > { %v1506_v20 = vmul.f32 %v2718_v19, %v2714_v2  ;;  %v2425_v19 = vld [vmem:[%s4055_s26] ss:$0 sm:$0xff] }
 0x300   : > { %2510 = vmatprep.mubr.msk.f32.mxu1 %vm1469_vm5, %v1506_v20 }
 0x301   : > { %2511 = vmatmul.mubr.msk.f32.vlgmr.msra.gmra.mxu1 %vm1469_vm5, %v1507_v21 }
 0x302   : > { %2521 = vmatprep.mubr.msk.f32.mxu1 %vm3190_vm2, %v3189_v4  ;;  %2514 = vmatpush3.msra.mxu1 %v1681_v58 }
 0x303   : > { %2515 = vmatprep.subr.mxu1 %v3189_v4 }
 0x304   : > { %2516 = vmatpush3.msra.mxu1 %v1680_v59 }
 0x305   : > { %2517 = vmatprep.subr.mxu1 %v3189_v4 }
 0x306   : > { %2518 = vmatpush3.msra.mxu1 %v1679_v60 }
 0x307   : > { %2519 = vmatprep.subr.mxu1 %v3189_v4 }
 0x308   : > { %2520 = vmatpush3.msra.mxu1 %v1678_v61 }
 0x309   : > { %2535 = vmatprep.subr.mxu1 %v3189_v4 }
 0x3c1   : > { %v2512_v23 = vpop.f32.mrf.mxu1 }
 0x3c2   : > { %v1603_v24 = vmul.f32 %v2512_v23, %v1599_v22 }
 0x3c3   : > { %v1585_v26 = vpop.f32.mrf.mxu1 }
 0x3c4   : > { %v1611_v27 = vsel %vm1182_vm3, %v1603_v24, 0.0  ;;  %v1602_v28 = vmul.f32 %v1597_v25, %v1585_v26  ;;  %v2427_v24 = vld [vmem:[%s4056_s9] ss:$0 sm:$0xff] }
 0x3c5   : > { %v1612_v29 = vrot.slane %v1611_v27, 4 }
 0x3c6   : > { %v1604_v30 = vsel %vm1182_vm3, %v1602_v28, 0.0 }
 0x3c7   : > { %v1613_v31 = vadd.f32 %v1612_v29, %v1611_v27  ;;  %v1605_v32 = vrot.slane %v1604_v30, 4 }
 0x3c9   : > { %v1614_v33 = vrot.slane %v1613_v31, 2  ;;  %v1606_v34 = vadd.f32 %v1605_v32, %v1604_v30 }
 0x3cb   : > { %v1615_v35 = vadd.f32 %v1614_v33, %v1613_v31  ;;  %v1607_v36 = vrot.slane %v1606_v34, 2 }
 0x3cd   : > { %v1616_v38 = vrot.slane %v1615_v35, 1  ;;  %v1608_v39 = vadd.f32 %v1607_v36, %v1606_v34  ;;  %v1884_v36 = vld [vmem:[%s3666_s20 + $0x10] sm:$0xff] }
 0x3cf   : > { %v1617_v40 = vadd.f32 %v1616_v38, %v1615_v35  ;;  %v1609_v41 = vrot.slane %v1608_v39, 1  ;;  %v1885_v35 = vld [vmem:[%s3666_s20 + $0x18] sm:$0xff]  ;;  %v1882_v38 = vld [vmem:[%s3666_s20] sm:$0xff] }
 0x3d1   : > { %v1610_v42 = vadd.f32 %v1609_v41, %v1608_v39  ;;  %v1622_v43 = vadd.f32 %v1618_v37, %v1617_v40  ;;  %v1883_v37 = vld [vmem:[%s3666_s20 + $0x8] sm:$0xff] }
 0x3d3   : > { %v1621_v44 = vadd.f32 %v1610_v42, %v3732_v11  ;;  %v1627_v45 = vrot.slane %v1622_v43, 7 }
 0x3d5   : > { %v1629_v46 = vsel %vm1628_vm6, %v1627_v45, %v1621_v44  ;;  %v2430_v45 = vld [vmem:[%s4058_s15] ss:$0 sm:$0xff] }
 0x3d6   : > { %v1632_v47 = vsel %vm1631_vm7, %v1629_v46, 0.0 }
 0x3d7   : > { %1633 = vadd.xlane.f32.xlu1 %v1632_v47 }
 0x460   : > { %v1634_v48 = vpop.xlane.xlu1 %1633 }
 0x461   : > { %v1636_v49 = vmul.f32 0.03125, %v1634_v48  ;;  %v1881_v48 = vld [vmem:[#allocation3] sm:$0x3] }
 0x463   : > { %v1638_v50 = vrot.slane %v1636_v49, 1  ;;  %v1641_v51 = vsub.f32 %v1621_v44, %v1636_v49 }
 0x465   : > { %v1642_v52 = vsub.f32 %v1622_v43, %v1638_v50  ;;  %v1643_v54 = vmul.f32 %v1641_v51, %v1641_v51  ;;  %v2429_v43 = vld [vmem:[%s1145_s16] ss:$0 sm:$0xff]  ;;  %s4059_s16 = sld [smem:[#allocation61_spill]] (!%p2432_p11) }
 0x467   : > { %v1644_v53 = vmul.f32 %v1642_v52, %v1642_v52 }
 0x469   : > { %v1647_v55 = vrot.slane %v1644_v53, 7 }
 0x46b   : > { %v1648_v56 = vsel %vm1628_vm6, %v1647_v55, %v1643_v54  ;;  %s4060_s11 = scalar_lea.vmem (!%p2432_p11), %s4059_s16, %s4085_s14 }
 0x46c   : > { %v1650_v57 = vsel %vm1631_vm7, %v1648_v56, 0.0 }
 0x46d   : > { %1651 = vadd.xlane.f32.xlu1 %v1650_v57 }
 0x4f6   : > { %v1652_v63 = vpop.xlane.xlu1 %1651 }
 0x4f7   : > { %v1653_v0 = vmul.f32 0.03125, %v1652_v63 }
 0x4f9   : > { %v1654_v1 = vadd.f32 1e-05, %v1653_v0 }
 0x4fb   : > { %2719 = vrsqrt.f32 %v1654_v1 }
 0x508   : > { %v2720_v2 = vpop.eup %2719 }
 0x509   : > { %v1657_v3 = vrot.slane %v2720_v2, 1  ;;  %v1660_v5 = vmul.f32 %v2720_v2, %v1641_v51 }
 0x50b   : > { %v1661_v7 = vmul.f32 %v1657_v3, %v1642_v52  ;;  %v1668_v8 = vmul.f32 %v2423_v6, %v1660_v5 }
 0x50d   : > { %v1669_v9 = vmul.f32 %v2423_v6, %v1661_v7  ;;  %v1676_v13 = vadd.f32 %v2424_v10, %v1668_v8 }
 0x50f   : > { %v1677_v12 = vadd.f32 %v2424_v10, %v1669_v9 }
 0x511   : > { %v1691_v14 = vrot.slane %v1677_v12, 7 }
 0x513   : > { %v1692_v15 = vsel %vm1628_vm6, %v1691_v14, %v1676_v13 }
 0x514   : > { %2522 = vmatmul.mubr.msk.f32.vlgmr.msra.gmra.mxu1 %vm1182_vm3, %v1692_v15 }
 0x515   : > { %2543 = vmatprep.mubr.msk.f32.mxu1 %vm3190_vm2, %v3189_v4  ;;  %2536 = vmatpush3.msra.mxu1 %v1885_v35 }
 0x516   : > { %2537 = vmatprep.subr.mxu1 %v3189_v4 }
 0x517   : > { %2538 = vmatpush3.msra.mxu1 %v1884_v36 }
 0x518   : > { %2539 = vmatprep.subr.mxu1 %v3189_v4 }
 0x519   : > { %2540 = vmatpush3.msra.mxu1 %v1883_v37 }
 0x51a   : > { %2541 = vmatprep.subr.mxu1 %v3189_v4 }
 0x51b   : > { %2542 = vmatpush3.msra.mxu1 %v1882_v38 }
 0x5d4   : > { %v1761_v20 = vpop.f32.mrf.mxu1 }
 0x5d5   : > { %v1762_v21 = vadd.f32 %v2425_v19, %v1761_v20 }
 0x5d6   : > { %v2523_v22 = vpop.f32.mrf.mxu1 }
 0x5d7   : > { %v1765_v23 = vmax.f32 %v1762_v21, 0.0 }
 0x5d9   : > { %2533 = vmatmul.mubr.msk.f32.vlgmr.msra.gmra.mxu0 %vm1182_vm3, %v1765_v23 }
 0x699   : > { %v1846_v25 = vpop.f32.mrf.mxu0 }
 0x69a   : > { %v1847_v26 = vadd.f32 %v2427_v24, %v1846_v25 }
 0x69b   : > { %v2534_v27 = vpop.f32.mrf.mxu0 }
 0x69c   : > { %v1851_v28 = vadd.f32 %v1847_v26, %v1692_v15 }
 0x69e   : > { %v1854_v29 = vsel %vm1631_vm7, %v1851_v28, 0.0 }
 0x69f   : > { %1855 = vadd.xlane.f32.xlu0 %v1854_v29 }
 0x728   : > { %v1856_v30 = vpop.xlane.xlu0 %1855 }
 0x729   : > { %v1857_v31 = vmul.f32 0.03125, %v1856_v30 }
 0x72b   : > { %v1858_v32 = vsub.f32 %v1851_v28, %v1857_v31 }
 0x72d   : > { %v1859_v33 = vmul.f32 %v1858_v32, %v1858_v32 }
 0x72f   : > { %v1860_v34 = vsel %vm1631_vm7, %v1859_v33, 0.0 }
 0x730   : > { %1861 = vadd.xlane.f32.xlu1 %v1860_v34 }
 0x7b9   : > { %v1862_v39 = vpop.xlane.xlu1 %1861 }
 0x7ba   : > { %v1863_v40 = vmul.f32 0.03125, %v1862_v39 }
 0x7bc   : > { %v1864_v41 = vadd.f32 1e-05, %v1863_v40 }
 0x7be   : > { %2721 = vrsqrt.f32 %v1864_v41 }
 0x7cb   : > { %v2722_v42 = vpop.eup %2721 }
 0x7cc   : > { %v1866_v44 = vmul.f32 %v2722_v42, %v1858_v32 }
 0x7ce   : > { %v1873_v46 = vmul.f32 %v2429_v43, %v1866_v44 }
 0x7d0   : > { %v1880_v47 = vadd.f32 %v2430_v45, %v1873_v46 }
 0x7d2   : > { %2544 = vmatmul.mubr.msk.f32.vlgmr.msra.gmra.mxu1 %vm1182_vm3, %v1880_v47 }
 0x891   : > { %1964 = sbr.rel (%p2432_p11) target bundleno = 2518 (0x9d6), region = 156 }
 0x892   : > { %v1955_v4 = vpop.f32.mrf.mxu1 }
 0x893   : > { %v1959_v49 = vadd.f32 %v1955_v4, %v1881_v48 }
 0x894   : > { %v2545_v50 = vpop.f32.mrf.mxu1 }
 0x895   : > { %1960 = vst.msk [vmem:[#allocation3] sm:$0x3] %vm1631_vm7, %v1959_v49 }
 0x896   : > { %v2433_v52 = vld [vmem:[%s4060_s11] ss:$0 sm:$0xff] }
 0x897   : > { %v2435_v2 = vld [vmem:[%s3673_s24] ss:$0 sm:$0xff] }
 0x89c   : > { %v1965_v51 = vld [vmem:[#allocation3] sm:$0x3] }
 0x89d   : > { %v1973_v53 = vadd.f32 %v2433_v52, %v1965_v51 }
 0x89f   : > { %v1974_v54 = vadd.f32 %v1973_v53, %v3732_v11  ;;  %v2434_v11 = vld [vmem:[%s1151_s1] ss:$0 sm:$0xff] }
 0x8a1   : > { %v1977_v55 = vsel %vm1631_vm7, %v1974_v54, 0.0 }
 0x8a2   : > { %1978 = vadd.xlane.f32.xlu0 %v1977_v55 }
 0x92b   : > { %v1979_v56 = vpop.xlane.xlu0 %1978 }
 0x92c   : > { %v1980_v57 = vmul.f32 0.03125, %v1979_v56 }
 0x92e   : > { %v1981_v58 = vsub.f32 %v1974_v54, %v1980_v57 }
 0x930   : > { %v1982_v59 = vmul.f32 %v1981_v58, %v1981_v58 }
 0x932   : > { %v1983_v60 = vsel %vm1631_vm7, %v1982_v59, 0.0 }
 0x933   : > { %1984 = vadd.xlane.f32.xlu0 %v1983_v60 }
 0x9bc   : > { %v1985_v61 = vpop.xlane.xlu0 %1984 }
 0x9bd   : > { %v1986_v62 = vmul.f32 0.03125, %v1985_v61 }
 0x9bf   : > { %v1987_v63 = vadd.f32 1e-05, %v1986_v62 }
 0x9c1   : > { %2723 = vrsqrt.f32 %v1987_v63 }
 0x9ce   : > { %v2724_v0 = vpop.eup %2723 }
 0x9cf   : > { %v1989_v1 = vmul.f32 %v2724_v0, %v1981_v58 }
 0x9d1   : > { %v1996_v3 = vmul.f32 %v2434_v11, %v1989_v1 }
 0x9d3   : > { %v2003_v5 = vadd.f32 %v2435_v2, %v1996_v3 }
 0x9d5   : > { %2004 = vst.msk [vmem:[#allocation2] sm:$0x3] %vm1631_vm7, %v2003_v5  ;;  %2005 = vst.msk [vmem:[#allocation22] sm:$0x3] %vm1631_vm7, %v2003_v5 }
 0x9d6 PF: > { %p2612_p6 = scmp.eq.s32.totalorder %s3463_s22, 3  ;;  %s3193_s0 = smov [#allocation22]  }
 0x9d7   : > { %s2013_s10 = sshll.u32 %s3193_s0, 4  ;;  %s2014_s10 = int_to_ptr.vmem [resolvable:$true] %s2013_s10 }
 0x9d8   : > { %s3031_s3 = scalar_lea.vmem %s2014_s10, 32  ;;  %p3038_p1 = scmp.lt.s32.totalorder %s2014_s10, %s2014_s10 }
 0x9d9   : > { %p3032_p4 = scmp.ne.s32.totalorder %s2014_s10, %s3031_s3  ;;  %p3039_p0 = scmp.lt.s32.totalorder %s3031_s3, %s3031_s3 }
 0x9db   : > { %p3033_p5 = pnand %p3032_p4, %p2612_p6  ;;  %p3040_p13 = por %p3039_p0, %p3038_p1 }
 0x9dd   : > { %p3034_p10 = pneg %p3033_p5 }
 0x9df   : > { %p3041_p8 = pnand %p3040_p13, %p3034_p10 }
 0x9e1   : > { %3044 = shalt.err (!%p3041_p8)
}
 0x9e2   : > { %s4062_s14 = sld [smem:[#allocation64_spill]] }
 0x9e8   : > { %2571 = dma.vmem_to_hbm [thread:$0]  (%p2612_p6), %s2014_s10, 32, %s4062_s14, [#allocation6]  }
 0x9e9   : > { %3128 = dma.done.wait (%p2612_p6), [#allocation6], 32  }
 0x9ea   : > { %3130 = vsyncadd (%p2612_p6), [#allocation6], 4294967264 }
 0x9eb PF: > { %s47_s4 = sadd.s32 1, %s3173_s4   ;;  %s4063_s1 = sld [smem:[#allocation32_spill]] }
 0x9ec   : > { %p44_p9 = scmp.ge.s32.totalorder %s47_s4, 6   ;;  %s4064_s22 = sld [smem:[#allocation33_spill]] }
 0x9ed   : > { %s4065_s6 = sld [smem:[#allocation34_spill]]  ;;  %s4071_s23 = smov %s4081_s7 }
 0x9ee   : > { %s4066_s25 = sld [smem:[#allocation43_spill]]  ;;  %s4072_s24 = smov %s3149_s2 }
 0x9ef   : > { %s4067_s3 = sld [smem:[#allocation37_spill]]  ;;  %46 = sbr.rel (!%p44_p9) target bundleno = 39 (0x27), region = 280 }
 0x9f0   : > { %s4068_s26 = sld [smem:[#allocation38_spill]] }
 0x9f1   : > { %s4069_s27 = sld [smem:[#allocation41_spill]] }
 0x9f2   : > { %s4070_s28 = sld [smem:[#allocation42_spill]] }
 0x9f3   : > { %s4073_s2 = smov %s4065_s6 }
 0x9f4   :  { %2026 = vsyncpa [#allocation5], 1 }
 0x9f5   :  { %2028 = vsyncpa [#allocation5 + $0x1], 1 }
 0x9f6   :  { %2029 = vsyncpa [#allocation8], 1 }
 0x9f7   :  { %2031 = vsyncpa [#allocation8 + $0x1], 1 }
 0x9f8   :  { %2032 = vsyncpa [#allocation11], 1 }
 0x9f9   :  { %2034 = vsyncpa [#allocation11 + $0x1], 1 }
 0x9fa   :  { %2035 = vsyncpa [#allocation14], 1 }
 0x9fb   :  { %2037 = vsyncpa [#allocation14 + $0x1], 1 }
 0x9fc   :  { %2038 = vsyncpa [#allocation17], 1 }
 0x9fd   :  { %2040 = vsyncpa [#allocation17 + $0x1], 1 }
 0x9fe   :  { %2041 = vsyncpa [#allocation20], 1 }
 0x9ff   :  { %2043 = vsyncpa [#allocation20 + $0x1], 1 }
 0xa00   :  { %2044 = vsyncpa [#allocation6], 1 }
 0xa01   :  { %2046 = vsyncpa [#allocation6 + $0x1], 1 }

</bundles_post_ra>
